<compile_context>
chip_gen: v6e
topology: v6e:2x2x1
jax: 0.10.0
libtpu: 0.0.40
codegen_flags: <defaults>
</compile_context>

<pallas_src>
from functools import partial

import jax
import jax.numpy as jnp
from jax import lax
from jax.experimental import pallas as pl
from jax.experimental.pallas import tpu as pltpu


def _bn_act(y, gamma, beta, *, eps, batchnorm, relu):
    """Per-channel train-mode BatchNorm over the lane axis + optional ReLU.

    y: (C, N) with N = batch * H * W on lanes.  gamma/beta: (C, 1).
    gamma is folded into the per-channel rsqrt scale (one fewer full-width mul).
    """
    if batchnorm:
        inv_n = 1.0 / float(y.shape[-1])
        mean = jnp.sum(y, axis=-1, keepdims=True) * inv_n            # (C, 1)
        d = y - mean
        var = jnp.sum(d * d, axis=-1, keepdims=True) * inv_n         # (C, 1), biased
        scale = lax.rsqrt(var + eps) * gamma                         # (C, 1)
        y = d * scale + beta
    if relu:
        y = jnp.maximum(y, 0.0)
    return y


def convblock_kernel(x_ref, mask_ref, w1s_ref, g1_ref, b1_ref,
                     w2_ref, g2_ref, b2_ref,
                     w3_ref, g3_ref, b3_ref,
                     gs_ref, bs_ref,
                     o_ref, *, W, eps, batchnorm, final_relu):
    x = x_ref[...]                                                   # (C_in, N)
    N = x.shape[-1]
    F1 = g1_ref.shape[0]

    # ---- conv1 + shortcut: both 1x1 convs fused into ONE MXU matmul over C_in.
    y1s = jnp.dot(w1s_ref[...], x, preferred_element_type=jnp.float32)  # (F1+F3, N)
    y1 = _bn_act(y1s[:F1], g1_ref[...], b1_ref[...],
                 eps=eps, batchnorm=batchnorm, relu=True)            # (F1, N)
    sc = _bn_act(y1s[F1:], gs_ref[...], bs_ref[...],
                 eps=eps, batchnorm=batchnorm, relu=False)           # (F3, N)

    # ---- conv2: 3x3, padding=1, stride=1 --------------------------------------
    # 9 accumulating per-tap MXU dots.  Each tap: XLU lane-roll of y1 by the
    # spatial offset, multiply by the precomputed halo mask (zeros anything that
    # crosses an image/batch boundary, including circular wraparound), then
    # acc += w_tap @ tap.
    acc = None
    t = 0
    for dy in (-1, 0, 1):
        for dx in (-1, 0, 1):
            s = dy * W + dx
            # shifted[p] = y1[p + s]  (circular; mask removes the wraparound)
            shifted = y1 if s == 0 else pltpu.roll(y1, (-s) % N, axis=1)
            tap = shifted * mask_ref[t]                              # (F1, N)
            contrib = jnp.dot(w2_ref[t], tap,
                              preferred_element_type=jnp.float32)    # (F2, N)
            acc = contrib if acc is None else acc + contrib
            t += 1
    y2 = _bn_act(acc, g2_ref[...], b2_ref[...],
                 eps=eps, batchnorm=batchnorm, relu=True)            # (F2, N)

    # ---- conv3: 1x1 conv + BN (no ReLU before the residual add) ---------------
    y3 = jnp.dot(w3_ref[...], y2, preferred_element_type=jnp.float32)  # (F3, N)
    y3 = _bn_act(y3, g3_ref[...], b3_ref[...],
                 eps=eps, batchnorm=batchnorm, relu=False)

    out = y3 + sc
    if final_relu:
        out = jnp.maximum(out, 0.0)
    o_ref[...] = out.astype(o_ref.dtype)


def conv_block(x, params, *, kernel_size=3, stride=1, final_relu=True,
               batchnorm=True, eps=1e-5):
    """x: (B, C_in, H, W) float32.  params: conv weights (OIHW) + BN gamma/beta."""
    assert kernel_size == 3, "padding=1 residual block requires kernel_size=3"
    assert stride == 1  # TODO(synk): stride > 1 not implemented.

    B, C_in, H, W = x.shape
    w1, w2, w3, ws = params["w1"], params["w2"], params["w3"], params["ws"]
    F1, F2, F3 = w1.shape[0], w2.shape[0], w3.shape[0]
    N = B * H * W

    # --- glue: channels on sublanes, batch*spatial on lanes (lane-dense) -------
    x_f = jnp.transpose(x, (1, 0, 2, 3)).reshape(C_in, N)
    # conv1 + shortcut weights stacked -> one matmul in-kernel.
    w1s = jnp.concatenate([w1.reshape(F1, C_in), ws.reshape(F3, C_in)], axis=0)
    # conv2 weight (F2, F1, 3, 3) -> (3, 3, F2, F1) -> (9, F2, F1): tap-major,
    # matching the (dy, dx) loop order in the kernel.
    w2m = jnp.transpose(w2, (2, 3, 0, 1)).reshape(9, F2, F1)
    w3m = w3.reshape(F3, F2)
    col = lambda v: v.reshape(-1, 1)

    # --- precomputed halo masks (9, 1, N): valid[p] iff lane p shifted by
    # (dy, dx) stays inside its own image.  Avoids in-kernel int div/mod chains.
    lane = jnp.arange(N, dtype=jnp.int32)
    row = (lane % (H * W)) // W
    c = lane % W
    masks = []
    for dy in (-1, 0, 1):
        for dx in (-1, 0, 1):
            valid = ((row + dy >= 0) & (row + dy < H) &
                     (c + dx >= 0) & (c + dx < W))
            masks.append(valid)
    mask = jnp.stack(masks).astype(x.dtype).reshape(9, 1, N)

    def full(shape):
        return pl.BlockSpec(shape, lambda i, _s=shape: (0,) * len(_s))

    kern = partial(convblock_kernel, W=W, eps=eps,
                   batchnorm=batchnorm, final_relu=final_relu)
    out_f = pl.pallas_call(
        kern,
        out_shape=jax.ShapeDtypeStruct((F3, N), x.dtype),
        grid=(1,),
        in_specs=[
            full((C_in, N)),
            full((9, 1, N)),
            full((F1 + F3, C_in)), full((F1, 1)), full((F1, 1)),
            full((9, F2, F1)), full((F2, 1)), full((F2, 1)),
            full((F3, F2)), full((F3, 1)), full((F3, 1)),
            full((F3, 1)), full((F3, 1)),
        ],
        out_specs=full((F3, N)),
        compiler_params=pltpu.CompilerParams(
            dimension_semantics=("arbitrary",),
            vmem_limit_bytes=32 * 1024 * 1024,
        ),
    )(x_f, mask,
      w1s, col(params["g1"]), col(params["b1"]),
      w2m, col(params["g2"]), col(params["b2"]),
      w3m, col(params["g3"]), col(params["b3"]),
      col(params["gs"]), col(params["bs"]))

    return jnp.transpose(out_f.reshape(F3, B, H, W), (1, 0, 2, 3))


def _reference(x, params, *, final_relu=True, batchnorm=True, eps=1e-5):
    """Pure-JAX reference matching PyTorch ConvBlock.forward (train-mode BN)."""
    def conv(y, w, padding=0):
        return lax.conv_general_dilated(
            y, w, window_strides=(1, 1),
            padding=[(padding, padding), (padding, padding)],
            dimension_numbers=("NCHW", "OIHW", "NCHW"),
            precision=lax.Precision.HIGHEST)

    def bn(y, gamma, beta):
        if not batchnorm:
            return y
        mean = y.mean(axis=(0, 2, 3), keepdims=True)
        var = ((y - mean) ** 2).mean(axis=(0, 2, 3), keepdims=True)
        return ((y - mean) / jnp.sqrt(var + eps)
                * gamma[None, :, None, None] + beta[None, :, None, None])

    out = jax.nn.relu(bn(conv(x, params["w1"]), params["g1"], params["b1"]))
    out = jax.nn.relu(bn(conv(out, params["w2"], padding=1), params["g2"], params["b2"]))
    out = bn(conv(out, params["w3"]), params["g3"], params["b3"])
    out = out + bn(conv(x, params["ws"]), params["gs"], params["bs"])
    if final_relu:
        out = jax.nn.relu(out)
    return out


if __name__ == "__main__":
    key = jax.random.PRNGKey(0)
    B, C_in, H, W = 2, 4, 16, 16
    F1, F2, F3 = 8, 8, 16
    K = 3

    keys = jax.random.split(key, 13)

    def u(k, shape, fan_in):
        bound = 1.0 / (fan_in ** 0.5)
        return jax.random.uniform(k, shape, jnp.float32, -bound, bound)

    params = dict(
        w1=u(keys[0], (F1, C_in, 1, 1), C_in),
        w2=u(keys[1], (F2, F1, K, K), F1 * K * K),
        w3=u(keys[2], (F3, F2, 1, 1), F2),
        ws=u(keys[3], (F3, C_in, 1, 1), C_in),
        g1=1.0 + 0.1 * jax.random.normal(keys[4], (F1,), jnp.float32),
        b1=0.1 * jax.random.normal(keys[5], (F1,), jnp.float32),
        g2=1.0 + 0.1 * jax.random.normal(keys[6], (F2,), jnp.float32),
        b2=0.1 * jax.random.normal(keys[7], (F2,), jnp.float32),
        g3=1.0 + 0.1 * jax.random.normal(keys[8], (F3,), jnp.float32),
        b3=0.1 * jax.random.normal(keys[9], (F3,), jnp.float32),
        gs=1.0 + 0.1 * jax.random.normal(keys[10], (F3,), jnp.float32),
        bs=0.1 * jax.random.normal(keys[11], (F3,), jnp.float32),
    )
    x = jax.random.normal(keys[12], (B, C_in, H, W), jnp.float32)

    out = conv_block(x, params, kernel_size=K, stride=1)
    jax.block_until_ready(out)

    ref = _reference(x, params)
    assert out.shape == (B, F3, H, W)
    max_err = float(jnp.max(jnp.abs(out - ref)))
    assert jnp.allclose(out, ref, atol=1e-4, rtol=1e-4), f"mismatch vs reference: {max_err}"
    print("KERNEL_OK")
</pallas_src>

<mosaic_0001>
module attributes {stable_mosaic.version = 11 : i64} {
  func.func @convblock_kernel(%arg0: i32, %arg1: memref<4x512xf32, #tpu.memory_space<vmem>>, %arg2: memref<9x1x512xf32, #tpu.memory_space<vmem>>, %arg3: memref<24x4xf32, #tpu.memory_space<vmem>>, %arg4: memref<8x1xf32, #tpu.memory_space<vmem>>, %arg5: memref<8x1xf32, #tpu.memory_space<vmem>>, %arg6: memref<9x8x8xf32, #tpu.memory_space<vmem>>, %arg7: memref<8x1xf32, #tpu.memory_space<vmem>>, %arg8: memref<8x1xf32, #tpu.memory_space<vmem>>, %arg9: memref<16x8xf32, #tpu.memory_space<vmem>>, %arg10: memref<16x1xf32, #tpu.memory_space<vmem>>, %arg11: memref<16x1xf32, #tpu.memory_space<vmem>>, %arg12: memref<16x1xf32, #tpu.memory_space<vmem>>, %arg13: memref<16x1xf32, #tpu.memory_space<vmem>>, %arg14: memref<16x512xf32, #tpu.memory_space<vmem>>) attributes {dimension_semantics = [#tpu.dimension_semantics<arbitrary>], iteration_bounds = array<i64: 1>, scalar_prefetch = 0 : i64, scratch_operands = 0 : i64, tpu.core_type = #tpu.core_type<tc>, window_params = [{pipeline_mode = #tpu.pipeline_mode<synchronous>, transform_indices = @transform_0, window_bounds = array<i64: 4, 512>}, {pipeline_mode = #tpu.pipeline_mode<synchronous>, transform_indices = @transform_1, window_bounds = array<i64: 9, 1, 512>}, {pipeline_mode = #tpu.pipeline_mode<synchronous>, transform_indices = @transform_2, window_bounds = array<i64: 24, 4>}, {pipeline_mode = #tpu.pipeline_mode<synchronous>, transform_indices = @transform_3, window_bounds = array<i64: 8, 1>}, {pipeline_mode = #tpu.pipeline_mode<synchronous>, transform_indices = @transform_4, window_bounds = array<i64: 8, 1>}, {pipeline_mode = #tpu.pipeline_mode<synchronous>, transform_indices = @transform_5, window_bounds = array<i64: 9, 8, 8>}, {pipeline_mode = #tpu.pipeline_mode<synchronous>, transform_indices = @transform_6, window_bounds = array<i64: 8, 1>}, {pipeline_mode = #tpu.pipeline_mode<synchronous>, transform_indices = @transform_7, window_bounds = array<i64: 8, 1>}, {pipeline_mode = #tpu.pipeline_mode<synchronous>, transform_indices = @transform_8, window_bounds = array<i64: 16, 8>}, {pipeline_mode = #tpu.pipeline_mode<synchronous>, transform_indices = @transform_9, window_bounds = array<i64: 16, 1>}, {pipeline_mode = #tpu.pipeline_mode<synchronous>, transform_indices = @transform_10, window_bounds = array<i64: 16, 1>}, {pipeline_mode = #tpu.pipeline_mode<synchronous>, transform_indices = @transform_11, window_bounds = array<i64: 16, 1>}, {pipeline_mode = #tpu.pipeline_mode<synchronous>, transform_indices = @transform_12, window_bounds = array<i64: 16, 1>}, {pipeline_mode = #tpu.pipeline_mode<synchronous>, transform_indices = @transform_13, window_bounds = array<i64: 16, 512>}]} {
    %c0 = arith.constant 0 : index
    %c0_0 = arith.constant 0 : index
    %0 = vector.load %arg1[%c0, %c0_0] : memref<4x512xf32, #tpu.memory_space<vmem>>, vector<4x512xf32>
    %c0_1 = arith.constant 0 : index
    %c0_2 = arith.constant 0 : index
    %1 = vector.load %arg3[%c0_1, %c0_2] : memref<24x4xf32, #tpu.memory_space<vmem>>, vector<24x4xf32>
    %cst = arith.constant dense<0.000000e+00> : vector<24x512xf32>
    %2 = tpu.matmul %1, %0, %cst {dimension_numbers = #tpu.dot_dimension_numbers<[1], [0], [0], [1], [0, 0, 1, 1], [], []>} : vector<24x4xf32>, vector<4x512xf32>, vector<24x512xf32> -> vector<24x512xf32>
    %3 = vector.extract_strided_slice %2 {offsets = [0, 0], sizes = [8, 512], strides = [1, 1]} : vector<24x512xf32> to vector<8x512xf32>
    %c0_3 = arith.constant 0 : index
    %c0_4 = arith.constant 0 : index
    %4 = vector.load %arg4[%c0_3, %c0_4] : memref<8x1xf32, #tpu.memory_space<vmem>>, vector<8x1xf32>
    %c0_5 = arith.constant 0 : index
    %c0_6 = arith.constant 0 : index
    %5 = vector.load %arg5[%c0_5, %c0_6] : memref<8x1xf32, #tpu.memory_space<vmem>>, vector<8x1xf32>
    %cst_7 = arith.constant dense<0.000000e+00> : vector<8xf32>
    %6 = vector.multi_reduction <add>, %3, %cst_7 [1] : vector<8x512xf32> to vector<8xf32>
    %7 = vector.shape_cast %6 : vector<8xf32> to vector<8x1xf32>
    %cst_8 = arith.constant 0.001953125 : f32
    %8 = vector.broadcast %cst_8 : f32 to vector<8x1xf32>
    %9 = arith.mulf %7, %8 : vector<8x1xf32>
    %10 = vector.broadcast %9 : vector<8x1xf32> to vector<8x512xf32>
    %11 = arith.subf %3, %10 : vector<8x512xf32>
    %12 = arith.mulf %11, %11 : vector<8x512xf32>
    %cst_9 = arith.constant dense<0.000000e+00> : vector<8xf32>
    %13 = vector.multi_reduction <add>, %12, %cst_9 [1] : vector<8x512xf32> to vector<8xf32>
    %14 = vector.shape_cast %13 : vector<8xf32> to vector<8x1xf32>
    %cst_10 = arith.constant 0.001953125 : f32
    %15 = vector.broadcast %cst_10 : f32 to vector<8x1xf32>
    %16 = arith.mulf %14, %15 : vector<8x1xf32>
    %cst_11 = arith.constant 9.99999974E-6 : f32
    %17 = vector.broadcast %cst_11 : f32 to vector<8x1xf32>
    %18 = arith.addf %16, %17 : vector<8x1xf32>
    %19 = math.rsqrt %18 : vector<8x1xf32>
    %20 = arith.mulf %19, %4 : vector<8x1xf32>
    %21 = vector.broadcast %20 : vector<8x1xf32> to vector<8x512xf32>
    %22 = arith.mulf %11, %21 : vector<8x512xf32>
    %23 = vector.broadcast %5 : vector<8x1xf32> to vector<8x512xf32>
    %24 = arith.addf %22, %23 : vector<8x512xf32>
    %cst_12 = arith.constant 0.000000e+00 : f32
    %25 = vector.broadcast %cst_12 : f32 to vector<8x512xf32>
    %26 = arith.maximumf %24, %25 : vector<8x512xf32>
    %27 = vector.extract_strided_slice %2 {offsets = [8, 0], sizes = [16, 512], strides = [1, 1]} : vector<24x512xf32> to vector<16x512xf32>
    %c0_13 = arith.constant 0 : index
    %c0_14 = arith.constant 0 : index
    %28 = vector.load %arg12[%c0_13, %c0_14] : memref<16x1xf32, #tpu.memory_space<vmem>>, vector<16x1xf32>
    %c0_15 = arith.constant 0 : index
    %c0_16 = arith.constant 0 : index
    %29 = vector.load %arg13[%c0_15, %c0_16] : memref<16x1xf32, #tpu.memory_space<vmem>>, vector<16x1xf32>
    %cst_17 = arith.constant dense<0.000000e+00> : vector<16xf32>
    %30 = vector.multi_reduction <add>, %27, %cst_17 [1] : vector<16x512xf32> to vector<16xf32>
    %31 = vector.shape_cast %30 : vector<16xf32> to vector<16x1xf32>
    %cst_18 = arith.constant 0.001953125 : f32
    %32 = vector.broadcast %cst_18 : f32 to vector<16x1xf32>
    %33 = arith.mulf %31, %32 : vector<16x1xf32>
    %34 = vector.broadcast %33 : vector<16x1xf32> to vector<16x512xf32>
    %35 = arith.subf %27, %34 : vector<16x512xf32>
    %36 = arith.mulf %35, %35 : vector<16x512xf32>
    %cst_19 = arith.constant dense<0.000000e+00> : vector<16xf32>
    %37 = vector.multi_reduction <add>, %36, %cst_19 [1] : vector<16x512xf32> to vector<16xf32>
    %38 = vector.shape_cast %37 : vector<16xf32> to vector<16x1xf32>
    %cst_20 = arith.constant 0.001953125 : f32
    %39 = vector.broadcast %cst_20 : f32 to vector<16x1xf32>
    %40 = arith.mulf %38, %39 : vector<16x1xf32>
    %cst_21 = arith.constant 9.99999974E-6 : f32
    %41 = vector.broadcast %cst_21 : f32 to vector<16x1xf32>
    %42 = arith.addf %40, %41 : vector<16x1xf32>
    %43 = math.rsqrt %42 : vector<16x1xf32>
    %44 = arith.mulf %43, %28 : vector<16x1xf32>
    %45 = vector.broadcast %44 : vector<16x1xf32> to vector<16x512xf32>
    %46 = arith.mulf %35, %45 : vector<16x512xf32>
    %47 = vector.broadcast %29 : vector<16x1xf32> to vector<16x512xf32>
    %48 = arith.addf %46, %47 : vector<16x512xf32>
    %c17_i32 = arith.constant 17 : i32
    %49 = tpu.dynamic_rotate %26 by %c17_i32 dim 1 : vector<8x512xf32>, i32 -> vector<8x512xf32>
    %c0_22 = arith.constant 0 : index
    %c0_23 = arith.constant 0 : index
    %c0_24 = arith.constant 0 : index
    %50 = vector.load %arg2[%c0_22, %c0_23, %c0_24] : memref<9x1x512xf32, #tpu.memory_space<vmem>>, vector<1x1x512xf32>
    %51 = vector.shape_cast %50 : vector<1x1x512xf32> to vector<1x512xf32>
    %52 = vector.broadcast %51 : vector<1x512xf32> to vector<8x512xf32>
    %53 = arith.mulf %49, %52 : vector<8x512xf32>
    %c0_25 = arith.constant 0 : index
    %c0_26 = arith.constant 0 : index
    %c0_27 = arith.constant 0 : index
    %54 = vector.load %arg6[%c0_25, %c0_26, %c0_27] : memref<9x8x8xf32, #tpu.memory_space<vmem>>, vector<1x8x8xf32>
    %55 = vector.shape_cast %54 : vector<1x8x8xf32> to vector<8x8xf32>
    %cst_28 = arith.constant dense<0.000000e+00> : vector<8x512xf32>
    %56 = tpu.matmul %55, %53, %cst_28 {dimension_numbers = #tpu.dot_dimension_numbers<[1], [0], [0], [1], [0, 0, 1, 1], [], []>} : vector<8x8xf32>, vector<8x512xf32>, vector<8x512xf32> -> vector<8x512xf32>
    %c16_i32 = arith.constant 16 : i32
    %57 = tpu.dynamic_rotate %26 by %c16_i32 dim 1 : vector<8x512xf32>, i32 -> vector<8x512xf32>
    %c1 = arith.constant 1 : index
    %c0_29 = arith.constant 0 : index
    %c0_30 = arith.constant 0 : index
    %58 = vector.load %arg2[%c1, %c0_29, %c0_30] : memref<9x1x512xf32, #tpu.memory_space<vmem>>, vector<1x1x512xf32>
    %59 = vector.shape_cast %58 : vector<1x1x512xf32> to vector<1x512xf32>
    %60 = vector.broadcast %59 : vector<1x512xf32> to vector<8x512xf32>
    %61 = arith.mulf %57, %60 : vector<8x512xf32>
    %c1_31 = arith.constant 1 : index
    %c0_32 = arith.constant 0 : index
    %c0_33 = arith.constant 0 : index
    %62 = vector.load %arg6[%c1_31, %c0_32, %c0_33] : memref<9x8x8xf32, #tpu.memory_space<vmem>>, vector<1x8x8xf32>
    %63 = vector.shape_cast %62 : vector<1x8x8xf32> to vector<8x8xf32>
    %cst_34 = arith.constant dense<0.000000e+00> : vector<8x512xf32>
    %64 = tpu.matmul %63, %61, %cst_34 {dimension_numbers = #tpu.dot_dimension_numbers<[1], [0], [0], [1], [0, 0, 1, 1], [], []>} : vector<8x8xf32>, vector<8x512xf32>, vector<8x512xf32> -> vector<8x512xf32>
    %65 = arith.addf %56, %64 : vector<8x512xf32>
    %c15_i32 = arith.constant 15 : i32
    %66 = tpu.dynamic_rotate %26 by %c15_i32 dim 1 : vector<8x512xf32>, i32 -> vector<8x512xf32>
    %c2 = arith.constant 2 : index
    %c0_35 = arith.constant 0 : index
    %c0_36 = arith.constant 0 : index
    %67 = vector.load %arg2[%c2, %c0_35, %c0_36] : memref<9x1x512xf32, #tpu.memory_space<vmem>>, vector<1x1x512xf32>
    %68 = vector.shape_cast %67 : vector<1x1x512xf32> to vector<1x512xf32>
    %69 = vector.broadcast %68 : vector<1x512xf32> to vector<8x512xf32>
    %70 = arith.mulf %66, %69 : vector<8x512xf32>
    %c2_37 = arith.constant 2 : index
    %c0_38 = arith.constant 0 : index
    %c0_39 = arith.constant 0 : index
    %71 = vector.load %arg6[%c2_37, %c0_38, %c0_39] : memref<9x8x8xf32, #tpu.memory_space<vmem>>, vector<1x8x8xf32>
    %72 = vector.shape_cast %71 : vector<1x8x8xf32> to vector<8x8xf32>
    %cst_40 = arith.constant dense<0.000000e+00> : vector<8x512xf32>
    %73 = tpu.matmul %72, %70, %cst_40 {dimension_numbers = #tpu.dot_dimension_numbers<[1], [0], [0], [1], [0, 0, 1, 1], [], []>} : vector<8x8xf32>, vector<8x512xf32>, vector<8x512xf32> -> vector<8x512xf32>
    %74 = arith.addf %65, %73 : vector<8x512xf32>
    %c1_i32 = arith.constant 1 : i32
    %75 = tpu.dynamic_rotate %26 by %c1_i32 dim 1 : vector<8x512xf32>, i32 -> vector<8x512xf32>
    %c3 = arith.constant 3 : index
    %c0_41 = arith.constant 0 : index
    %c0_42 = arith.constant 0 : index
    %76 = vector.load %arg2[%c3, %c0_41, %c0_42] : memref<9x1x512xf32, #tpu.memory_space<vmem>>, vector<1x1x512xf32>
    %77 = vector.shape_cast %76 : vector<1x1x512xf32> to vector<1x512xf32>
    %78 = vector.broadcast %77 : vector<1x512xf32> to vector<8x512xf32>
    %79 = arith.mulf %75, %78 : vector<8x512xf32>
    %c3_43 = arith.constant 3 : index
    %c0_44 = arith.constant 0 : index
    %c0_45 = arith.constant 0 : index
    %80 = vector.load %arg6[%c3_43, %c0_44, %c0_45] : memref<9x8x8xf32, #tpu.memory_space<vmem>>, vector<1x8x8xf32>
    %81 = vector.shape_cast %80 : vector<1x8x8xf32> to vector<8x8xf32>
    %cst_46 = arith.constant dense<0.000000e+00> : vector<8x512xf32>
    %82 = tpu.matmul %81, %79, %cst_46 {dimension_numbers = #tpu.dot_dimension_numbers<[1], [0], [0], [1], [0, 0, 1, 1], [], []>} : vector<8x8xf32>, vector<8x512xf32>, vector<8x512xf32> -> vector<8x512xf32>
    %83 = arith.addf %74, %82 : vector<8x512xf32>
    %c4 = arith.constant 4 : index
    %c0_47 = arith.constant 0 : index
    %c0_48 = arith.constant 0 : index
    %84 = vector.load %arg2[%c4, %c0_47, %c0_48] : memref<9x1x512xf32, #tpu.memory_space<vmem>>, vector<1x1x512xf32>
    %85 = vector.shape_cast %84 : vector<1x1x512xf32> to vector<1x512xf32>
    %86 = vector.broadcast %85 : vector<1x512xf32> to vector<8x512xf32>
    %87 = arith.mulf %26, %86 : vector<8x512xf32>
    %c4_49 = arith.constant 4 : index
    %c0_50 = arith.constant 0 : index
    %c0_51 = arith.constant 0 : index
    %88 = vector.load %arg6[%c4_49, %c0_50, %c0_51] : memref<9x8x8xf32, #tpu.memory_space<vmem>>, vector<1x8x8xf32>
    %89 = vector.shape_cast %88 : vector<1x8x8xf32> to vector<8x8xf32>
    %cst_52 = arith.constant dense<0.000000e+00> : vector<8x512xf32>
    %90 = tpu.matmul %89, %87, %cst_52 {dimension_numbers = #tpu.dot_dimension_numbers<[1], [0], [0], [1], [0, 0, 1, 1], [], []>} : vector<8x8xf32>, vector<8x512xf32>, vector<8x512xf32> -> vector<8x512xf32>
    %91 = arith.addf %83, %90 : vector<8x512xf32>
    %c511_i32 = arith.constant 511 : i32
    %92 = tpu.dynamic_rotate %26 by %c511_i32 dim 1 : vector<8x512xf32>, i32 -> vector<8x512xf32>
    %c5 = arith.constant 5 : index
    %c0_53 = arith.constant 0 : index
    %c0_54 = arith.constant 0 : index
    %93 = vector.load %arg2[%c5, %c0_53, %c0_54] : memref<9x1x512xf32, #tpu.memory_space<vmem>>, vector<1x1x512xf32>
    %94 = vector.shape_cast %93 : vector<1x1x512xf32> to vector<1x512xf32>
    %95 = vector.broadcast %94 : vector<1x512xf32> to vector<8x512xf32>
    %96 = arith.mulf %92, %95 : vector<8x512xf32>
    %c5_55 = arith.constant 5 : index
    %c0_56 = arith.constant 0 : index
    %c0_57 = arith.constant 0 : index
    %97 = vector.load %arg6[%c5_55, %c0_56, %c0_57] : memref<9x8x8xf32, #tpu.memory_space<vmem>>, vector<1x8x8xf32>
    %98 = vector.shape_cast %97 : vector<1x8x8xf32> to vector<8x8xf32>
    %cst_58 = arith.constant dense<0.000000e+00> : vector<8x512xf32>
    %99 = tpu.matmul %98, %96, %cst_58 {dimension_numbers = #tpu.dot_dimension_numbers<[1], [0], [0], [1], [0, 0, 1, 1], [], []>} : vector<8x8xf32>, vector<8x512xf32>, vector<8x512xf32> -> vector<8x512xf32>
    %100 = arith.addf %91, %99 : vector<8x512xf32>
    %c497_i32 = arith.constant 497 : i32
    %101 = tpu.dynamic_rotate %26 by %c497_i32 dim 1 : vector<8x512xf32>, i32 -> vector<8x512xf32>
    %c6 = arith.constant 6 : index
    %c0_59 = arith.constant 0 : index
    %c0_60 = arith.constant 0 : index
    %102 = vector.load %arg2[%c6, %c0_59, %c0_60] : memref<9x1x512xf32, #tpu.memory_space<vmem>>, vector<1x1x512xf32>
    %103 = vector.shape_cast %102 : vector<1x1x512xf32> to vector<1x512xf32>
    %104 = vector.broadcast %103 : vector<1x512xf32> to vector<8x512xf32>
    %105 = arith.mulf %101, %104 : vector<8x512xf32>
    %c6_61 = arith.constant 6 : index
    %c0_62 = arith.constant 0 : index
    %c0_63 = arith.constant 0 : index
    %106 = vector.load %arg6[%c6_61, %c0_62, %c0_63] : memref<9x8x8xf32, #tpu.memory_space<vmem>>, vector<1x8x8xf32>
    %107 = vector.shape_cast %106 : vector<1x8x8xf32> to vector<8x8xf32>
    %cst_64 = arith.constant dense<0.000000e+00> : vector<8x512xf32>
    %108 = tpu.matmul %107, %105, %cst_64 {dimension_numbers = #tpu.dot_dimension_numbers<[1], [0], [0], [1], [0, 0, 1, 1], [], []>} : vector<8x8xf32>, vector<8x512xf32>, vector<8x512xf32> -> vector<8x512xf32>
    %109 = arith.addf %100, %108 : vector<8x512xf32>
    %c496_i32 = arith.constant 496 : i32
    %110 = tpu.dynamic_rotate %26 by %c496_i32 dim 1 : vector<8x512xf32>, i32 -> vector<8x512xf32>
    %c7 = arith.constant 7 : index
    %c0_65 = arith.constant 0 : index
    %c0_66 = arith.constant 0 : index
    %111 = vector.load %arg2[%c7, %c0_65, %c0_66] : memref<9x1x512xf32, #tpu.memory_space<vmem>>, vector<1x1x512xf32>
    %112 = vector.shape_cast %111 : vector<1x1x512xf32> to vector<1x512xf32>
    %113 = vector.broadcast %112 : vector<1x512xf32> to vector<8x512xf32>
    %114 = arith.mulf %110, %113 : vector<8x512xf32>
    %c7_67 = arith.constant 7 : index
    %c0_68 = arith.constant 0 : index
    %c0_69 = arith.constant 0 : index
    %115 = vector.load %arg6[%c7_67, %c0_68, %c0_69] : memref<9x8x8xf32, #tpu.memory_space<vmem>>, vector<1x8x8xf32>
    %116 = vector.shape_cast %115 : vector<1x8x8xf32> to vector<8x8xf32>
    %cst_70 = arith.constant dense<0.000000e+00> : vector<8x512xf32>
    %117 = tpu.matmul %116, %114, %cst_70 {dimension_numbers = #tpu.dot_dimension_numbers<[1], [0], [0], [1], [0, 0, 1, 1], [], []>} : vector<8x8xf32>, vector<8x512xf32>, vector<8x512xf32> -> vector<8x512xf32>
    %118 = arith.addf %109, %117 : vector<8x512xf32>
    %c495_i32 = arith.constant 495 : i32
    %119 = tpu.dynamic_rotate %26 by %c495_i32 dim 1 : vector<8x512xf32>, i32 -> vector<8x512xf32>
    %c8 = arith.constant 8 : index
    %c0_71 = arith.constant 0 : index
    %c0_72 = arith.constant 0 : index
    %120 = vector.load %arg2[%c8, %c0_71, %c0_72] : memref<9x1x512xf32, #tpu.memory_space<vmem>>, vector<1x1x512xf32>
    %121 = vector.shape_cast %120 : vector<1x1x512xf32> to vector<1x512xf32>
    %122 = vector.broadcast %121 : vector<1x512xf32> to vector<8x512xf32>
    %123 = arith.mulf %119, %122 : vector<8x512xf32>
    %c8_73 = arith.constant 8 : index
    %c0_74 = arith.constant 0 : index
    %c0_75 = arith.constant 0 : index
    %124 = vector.load %arg6[%c8_73, %c0_74, %c0_75] : memref<9x8x8xf32, #tpu.memory_space<vmem>>, vector<1x8x8xf32>
    %125 = vector.shape_cast %124 : vector<1x8x8xf32> to vector<8x8xf32>
    %cst_76 = arith.constant dense<0.000000e+00> : vector<8x512xf32>
    %126 = tpu.matmul %125, %123, %cst_76 {dimension_numbers = #tpu.dot_dimension_numbers<[1], [0], [0], [1], [0, 0, 1, 1], [], []>} : vector<8x8xf32>, vector<8x512xf32>, vector<8x512xf32> -> vector<8x512xf32>
    %127 = arith.addf %118, %126 : vector<8x512xf32>
    %c0_77 = arith.constant 0 : index
    %c0_78 = arith.constant 0 : index
    %128 = vector.load %arg7[%c0_77, %c0_78] : memref<8x1xf32, #tpu.memory_space<vmem>>, vector<8x1xf32>
    %c0_79 = arith.constant 0 : index
    %c0_80 = arith.constant 0 : index
    %129 = vector.load %arg8[%c0_79, %c0_80] : memref<8x1xf32, #tpu.memory_space<vmem>>, vector<8x1xf32>
    %cst_81 = arith.constant dense<0.000000e+00> : vector<8xf32>
    %130 = vector.multi_reduction <add>, %127, %cst_81 [1] : vector<8x512xf32> to vector<8xf32>
    %131 = vector.shape_cast %130 : vector<8xf32> to vector<8x1xf32>
    %cst_82 = arith.constant 0.001953125 : f32
    %132 = vector.broadcast %cst_82 : f32 to vector<8x1xf32>
    %133 = arith.mulf %131, %132 : vector<8x1xf32>
    %134 = vector.broadcast %133 : vector<8x1xf32> to vector<8x512xf32>
    %135 = arith.subf %127, %134 : vector<8x512xf32>
    %136 = arith.mulf %135, %135 : vector<8x512xf32>
    %cst_83 = arith.constant dense<0.000000e+00> : vector<8xf32>
    %137 = vector.multi_reduction <add>, %136, %cst_83 [1] : vector<8x512xf32> to vector<8xf32>
    %138 = vector.shape_cast %137 : vector<8xf32> to vector<8x1xf32>
    %cst_84 = arith.constant 0.001953125 : f32
    %139 = vector.broadcast %cst_84 : f32 to vector<8x1xf32>
    %140 = arith.mulf %138, %139 : vector<8x1xf32>
    %cst_85 = arith.constant 9.99999974E-6 : f32
    %141 = vector.broadcast %cst_85 : f32 to vector<8x1xf32>
    %142 = arith.addf %140, %141 : vector<8x1xf32>
    %143 = math.rsqrt %142 : vector<8x1xf32>
    %144 = arith.mulf %143, %128 : vector<8x1xf32>
    %145 = vector.broadcast %144 : vector<8x1xf32> to vector<8x512xf32>
    %146 = arith.mulf %135, %145 : vector<8x512xf32>
    %147 = vector.broadcast %129 : vector<8x1xf32> to vector<8x512xf32>
    %148 = arith.addf %146, %147 : vector<8x512xf32>
    %cst_86 = arith.constant 0.000000e+00 : f32
    %149 = vector.broadcast %cst_86 : f32 to vector<8x512xf32>
    %150 = arith.maximumf %148, %149 : vector<8x512xf32>
    %c0_87 = arith.constant 0 : index
    %c0_88 = arith.constant 0 : index
    %151 = vector.load %arg9[%c0_87, %c0_88] : memref<16x8xf32, #tpu.memory_space<vmem>>, vector<16x8xf32>
    %cst_89 = arith.constant dense<0.000000e+00> : vector<16x512xf32>
    %152 = tpu.matmul %151, %150, %cst_89 {dimension_numbers = #tpu.dot_dimension_numbers<[1], [0], [0], [1], [0, 0, 1, 1], [], []>} : vector<16x8xf32>, vector<8x512xf32>, vector<16x512xf32> -> vector<16x512xf32>
    %c0_90 = arith.constant 0 : index
    %c0_91 = arith.constant 0 : index
    %153 = vector.load %arg10[%c0_90, %c0_91] : memref<16x1xf32, #tpu.memory_space<vmem>>, vector<16x1xf32>
    %c0_92 = arith.constant 0 : index
    %c0_93 = arith.constant 0 : index
    %154 = vector.load %arg11[%c0_92, %c0_93] : memref<16x1xf32, #tpu.memory_space<vmem>>, vector<16x1xf32>
    %cst_94 = arith.constant dense<0.000000e+00> : vector<16xf32>
    %155 = vector.multi_reduction <add>, %152, %cst_94 [1] : vector<16x512xf32> to vector<16xf32>
    %156 = vector.shape_cast %155 : vector<16xf32> to vector<16x1xf32>
    %cst_95 = arith.constant 0.001953125 : f32
    %157 = vector.broadcast %cst_95 : f32 to vector<16x1xf32>
    %158 = arith.mulf %156, %157 : vector<16x1xf32>
    %159 = vector.broadcast %158 : vector<16x1xf32> to vector<16x512xf32>
    %160 = arith.subf %152, %159 : vector<16x512xf32>
    %161 = arith.mulf %160, %160 : vector<16x512xf32>
    %cst_96 = arith.constant dense<0.000000e+00> : vector<16xf32>
    %162 = vector.multi_reduction <add>, %161, %cst_96 [1] : vector<16x512xf32> to vector<16xf32>
    %163 = vector.shape_cast %162 : vector<16xf32> to vector<16x1xf32>
    %cst_97 = arith.constant 0.001953125 : f32
    %164 = vector.broadcast %cst_97 : f32 to vector<16x1xf32>
    %165 = arith.mulf %163, %164 : vector<16x1xf32>
    %cst_98 = arith.constant 9.99999974E-6 : f32
    %166 = vector.broadcast %cst_98 : f32 to vector<16x1xf32>
    %167 = arith.addf %165, %166 : vector<16x1xf32>
    %168 = math.rsqrt %167 : vector<16x1xf32>
    %169 = arith.mulf %168, %153 : vector<16x1xf32>
    %170 = vector.broadcast %169 : vector<16x1xf32> to vector<16x512xf32>
    %171 = arith.mulf %160, %170 : vector<16x512xf32>
    %172 = vector.broadcast %154 : vector<16x1xf32> to vector<16x512xf32>
    %173 = arith.addf %171, %172 : vector<16x512xf32>
    %174 = arith.addf %173, %48 : vector<16x512xf32>
    %cst_99 = arith.constant 0.000000e+00 : f32
    %175 = vector.broadcast %cst_99 : f32 to vector<16x512xf32>
    %176 = arith.maximumf %174, %175 : vector<16x512xf32>
    %c0_100 = arith.constant 0 : index
    %c0_101 = arith.constant 0 : index
    %177 = vector.load %arg14[%c0_100, %c0_101] : memref<16x512xf32, #tpu.memory_space<vmem>>, vector<16x512xf32>
    tpu.vector_store %arg14[%c0_100, %c0_101], %176 {strides = array<i32>} : memref<16x512xf32, #tpu.memory_space<vmem>>, vector<16x512xf32>,
    return
  }
  func.func @transform_0(%arg0: i32) -> (i32, i32) {
    %c0_i32 = arith.constant 0 : i32
    %c0_i32_0 = arith.constant 0 : i32
    %c0_i32_1 = arith.constant 0 : i32
    return %c0_i32, %c0_i32_0 : i32, i32
  }
  func.func @transform_1(%arg0: i32) -> (i32, i32, i32) {
    %c0_i32 = arith.constant 0 : i32
    %c0_i32_0 = arith.constant 0 : i32
    %c0_i32_1 = arith.constant 0 : i32
    %c0_i32_2 = arith.constant 0 : i32
    return %c0_i32, %c0_i32_0, %c0_i32_1 : i32, i32, i32
  }
  func.func @transform_2(%arg0: i32) -> (i32, i32) {
    %c0_i32 = arith.constant 0 : i32
    %c0_i32_0 = arith.constant 0 : i32
    %c0_i32_1 = arith.constant 0 : i32
    return %c0_i32, %c0_i32_0 : i32, i32
  }
  func.func @transform_3(%arg0: i32) -> (i32, i32) {
    %c0_i32 = arith.constant 0 : i32
    %c0_i32_0 = arith.constant 0 : i32
    %c0_i32_1 = arith.constant 0 : i32
    return %c0_i32, %c0_i32_0 : i32, i32
  }
  func.func @transform_4(%arg0: i32) -> (i32, i32) {
    %c0_i32 = arith.constant 0 : i32
    %c0_i32_0 = arith.constant 0 : i32
    %c0_i32_1 = arith.constant 0 : i32
    return %c0_i32, %c0_i32_0 : i32, i32
  }
  func.func @transform_5(%arg0: i32) -> (i32, i32, i32) {
    %c0_i32 = arith.constant 0 : i32
    %c0_i32_0 = arith.constant 0 : i32
    %c0_i32_1 = arith.constant 0 : i32
    %c0_i32_2 = arith.constant 0 : i32
    return %c0_i32, %c0_i32_0, %c0_i32_1 : i32, i32, i32
  }
  func.func @transform_6(%arg0: i32) -> (i32, i32) {
    %c0_i32 = arith.constant 0 : i32
    %c0_i32_0 = arith.constant 0 : i32
    %c0_i32_1 = arith.constant 0 : i32
    return %c0_i32, %c0_i32_0 : i32, i32
  }
  func.func @transform_7(%arg0: i32) -> (i32, i32) {
    %c0_i32 = arith.constant 0 : i32
    %c0_i32_0 = arith.constant 0 : i32
    %c0_i32_1 = arith.constant 0 : i32
    return %c0_i32, %c0_i32_0 : i32, i32
  }
  func.func @transform_8(%arg0: i32) -> (i32, i32) {
    %c0_i32 = arith.constant 0 : i32
    %c0_i32_0 = arith.constant 0 : i32
    %c0_i32_1 = arith.constant 0 : i32
    return %c0_i32, %c0_i32_0 : i32, i32
  }
  func.func @transform_9(%arg0: i32) -> (i32, i32) {
    %c0_i32 = arith.constant 0 : i32
    %c0_i32_0 = arith.constant 0 : i32
    %c0_i32_1 = arith.constant 0 : i32
    return %c0_i32, %c0_i32_0 : i32, i32
  }
  func.func @transform_10(%arg0: i32) -> (i32, i32) {
    %c0_i32 = arith.constant 0 : i32
    %c0_i32_0 = arith.constant 0 : i32
    %c0_i32_1 = arith.constant 0 : i32
    return %c0_i32, %c0_i32_0 : i32, i32
  }
  func.func @transform_11(%arg0: i32) -> (i32, i32) {
    %c0_i32 = arith.constant 0 : i32
    %c0_i32_0 = arith.constant 0 : i32
    %c0_i32_1 = arith.constant 0 : i32
    return %c0_i32, %c0_i32_0 : i32, i32
  }
  func.func @transform_12(%arg0: i32) -> (i32, i32) {
    %c0_i32 = arith.constant 0 : i32
    %c0_i32_0 = arith.constant 0 : i32
    %c0_i32_1 = arith.constant 0 : i32
    return %c0_i32, %c0_i32_0 : i32, i32
  }
  func.func @transform_13(%arg0: i32) -> (i32, i32) {
    %c0_i32 = arith.constant 0 : i32
    %c0_i32_0 = arith.constant 0 : i32
    %c0_i32_1 = arith.constant 0 : i32
    return %c0_i32, %c0_i32_0 : i32, i32
  }
}

</mosaic_0001>

<bundles_post_ra>
// kernel: tpu_custom_call.1
= control target key start
LH: loop header
LB: loop body
LE: loop exit
PB: predicated region body
PF: predicated region fallthrough
CT: control target
= control target key end

     0   :  { %vm64_vm0 = vcmask 1043456   ;;  %v2505_v3 = vmov 0.0   ;;  %s3048_s0 = inlined_call_operand.vmem [shape: f32[4,512], index: 0, kind: input, shape index: {}]   ;;  %s3049_s1 = inlined_call_operand.vmem [shape: f32[9,1,512], index: 1, kind: input, shape index: {}]   ;;  %s3050_s2 = inlined_call_operand.vmem [shape: f32[24,4], index: 2, kind: input, shape index: {}]   ;;  %s3051_s3 = inlined_call_operand.vmem [shape: f32[8,1], index: 3, kind: input, shape index: {}]   ;;  %s3052_s4 = inlined_call_operand.vmem [shape: f32[8,1], index: 4, kind: input, shape index: {}]   ;;  %s3053_s5 = inlined_call_operand.vmem [shape: f32[9,8,8], index: 5, kind: input, shape index: {}]   ;;  %s3054_s6 = inlined_call_operand.vmem [shape: f32[8,1], index: 6, kind: input, shape index: {}]   ;;  %s3055_s7 = inlined_call_operand.vmem [shape: f32[8,1], index: 7, kind: input, shape index: {}]   ;;  %s3056_s8 = inlined_call_operand.vmem [shape: f32[16,8], index: 8, kind: input, shape index: {}]   ;;  %s3057_s9 = inlined_call_operand.vmem [shape: f32[16,1], index: 9, kind: input, shape index: {}]   ;;  %s3058_s10 = inlined_call_operand.vmem [shape: f32[16,1], index: 10, kind: input, shape index: {}]   ;;  %s3059_s11 = inlined_call_operand.vmem [shape: f32[16,1], index: 11, kind: input, shape index: {}]   ;;  %s3060_s12 = inlined_call_operand.vmem [shape: f32[16,1], index: 12, kind: input, shape index: {}]   ;;  %s3061_s13 = inlined_call_operand.hbm [shape: f32[16,512], index: 13, kind: output, shape index: {}]  }
   0x1   :  { %v45_v0 = vld [vmem:[%s3048_s0] sm:$0xff]  ;;  %v46_v1 = vld [vmem:[%s3048_s0 + $0x8] sm:$0xff]  ;;  %137 = vmatprep.mubr.f32.mxu0 %v2505_v3  ;;  %220 = vmatprep.mubr.f32.mxu1 %v2505_v3 }
   0x2   :  { %v52_v2 = vcombine.high %v45_v0, %v45_v0  ;;  %v53_v4 = vcombine.high %v46_v1, %v46_v1 }
   0x3   :  { %18 = vsyncpa [#allocation3], 0  ;;  %v47_v5 = vld [vmem:[%s3050_s2] sm:$0xff]  ;;  %vm54_vm1 = vcmask 31744   ;;  %v2506_v26 = vmov 0   ;;  %v48_v46 = vld [vmem:[%s3050_s2 + $0x8] sm:$0xff]  ;;  %v380_v50 = vlaneseq }
   0x4   :  { %2406 = vmatprep.subr.msk.mxu0 %vm64_vm0, %v52_v2  ;;  %2411 = vmatprep.subr.msk.mxu1 %vm64_vm0, %v53_v4  ;;  %v239_v30 = vld [vmem:[%s3051_s3] sm:$0xff]  ;;  %s2507_s3 = smov 16   ;;  %s2508_s18 = smov 17   ;;  %v49_v49 = vld [vmem:[%s3050_s2 + $0x10] sm:$0xff]  ;;  %v2417_v2 = vld [vmem:[%s3053_s5 + $0x8] sm:$0xff]  ;;  %vm456_vm3 = vcmask 64512  }
   0x5   :  { %2407 = vmatpush1.msk.msra.mxu0 %vm64_vm0, %v45_v0  ;;  %2412 = vmatpush1.msk.msra.mxu1 %vm64_vm0, %v46_v1  ;;  %v240_v33 = vld [vmem:[%s3052_s4] sm:$0xff]  ;;  %s2509_s21 = smov 15   ;;  %s2510_s2 = smov 1   ;;  %v390_v51 = vshrl.u32 %v380_v50, 7  ;;  %v2663_v52 = vand.u32 127, %v380_v50 }
   0x6   :  { %2408 = vmatmul.mubr.msk.f32.vlgmr.msra.gmra.mxu0 %vm54_vm1, %v47_v5  ;;  %2413 = vmatmul.mubr.msk.f32.vlgmr.msra.gmra.mxu1 %vm54_vm1, %v47_v5  ;;  %s2511_s22 = smov 127   ;;  %s2512_s23 = smov 113   ;;  %v2416_v53 = vld [vmem:[%s3049_s1 + $0x4] sm:$0xf]  ;;  %v387_v4 = vld [vmem:[%s3049_s1] sm:$0xf] }
   0x7   :  { %143 = vmatprep.mubr.f32.mxu0 %v2505_v3  ;;  %226 = vmatprep.mubr.f32.mxu1 %v2505_v3  ;;  %s2513_s24 = smov 112   ;;  %s2514_s25 = smov 111   ;;  %v2668_v54 = vsub.s32 1, %v390_v51  ;;  %vm422_vm2 = vcmp.lt.s32.totalorder %v2663_v52, 16  ;;  %v2672_v58 = vsub.s32 0, %v390_v51  ;;  %vm382_vm4 = vcmp.lt.s32.totalorder %v2663_v52, 17 }
   0x8   :  { %2467 = vset.pattern.permute.xlu1 %v2506_v26  ;;  %2468 = vset.pattern.permute.xlu0 %v2506_v26  ;;  %vm755_vm5 = vcmp.lt.s32.totalorder %v2663_v52, 15  ;;  %vm946_vm6 = vcmp.lt.s32.totalorder %v2663_v52, 1  ;;  %vm1315_vm7 = vcmp.lt.s32.totalorder %v2663_v52, 127  ;;  %vm1506_vm8 = vcmp.lt.s32.totalorder %v2663_v52, 113 }
   0x9   :  { %v437_v55 = vrot.slane %v2416_v53, %v2668_v54  ;;  %v433_v61 = vrot.slane %v2416_v53, %v2672_v58  ;;  %vm1697_vm9 = vcmp.lt.s32.totalorder %v2663_v52, 112  ;;  %vm1888_vm10 = vcmp.lt.s32.totalorder %v2663_v52, 111 }
   0xa   :  { %2409 = vmatmul.mubr.msk.f32.gmra.mxu0 %vm54_vm1, %v48_v46  ;;  %2414 = vmatmul.mubr.msk.f32.gmra.mxu1 %vm54_vm1, %v48_v46 }
   0xb   :  { %149 = vmatprep.mubr.f32.mxu0 %v2505_v3  ;;  %232 = vmatprep.mubr.f32.mxu1 %v2505_v3 }
   0xe   :  { %2410 = vmatmul.mubr.msk.f32.gmra.mxu0 %vm54_vm1, %v49_v49  ;;  %2415 = vmatmul.mubr.msk.f32.gmra.mxu1 %vm54_vm1, %v49_v49  ;;  %v2426_v49 = vld [vmem:[%s3049_s1 + $0xc] sm:$0xf] }
   0xf   :  { %524 = vmatprep.mubr.f32.mxu0 %v2505_v3  ;;  %595 = vmatprep.mubr.f32.mxu1 %v2505_v3 }
  0xc6   :  { %v139_v6 = vpop.f32.mrf.mxu0  ;;  %v222_v8 = vpop.f32.mrf.mxu1 }
  0xc8   :  { %v141_v7 = vpop.f32.mrf.mxu0  ;;  %v224_v11 = vpop.f32.mrf.mxu1 }
  0xc9   :  { %v241_v9 = vadd.f32 %v141_v7, %v139_v6 }
  0xca   :  { %v2891_v52 = vpop.f32.mrf.mxu0 }
  0xcb   :  { %v242_v10 = vadd.f32 %v241_v9, %v222_v8 }
  0xcd   :  { %v243_v12 = vadd.f32 %v242_v10, %v224_v11 }
  0xcf   :  { %244 = vadd.xlane.f32.xlu0 %v243_v12 }
 0x158   :  { %v245_v13 = vpop.xlane.xlu0 %244 }
 0x159   :  { %v246_v14 = vmul.f32 0.001953125, %v245_v13 }
 0x15b   :  { %v247_v15 = vsub.f32 %v139_v6, %v246_v14  ;;  %v248_v16 = vsub.f32 %v141_v7, %v246_v14  ;;  %v249_v17 = vsub.f32 %v222_v8, %v246_v14  ;;  %v250_v18 = vsub.f32 %v224_v11, %v246_v14 }
 0x15c   :  { %v396_v7 = vrot.slane %v387_v4, %v2668_v54  ;;  %v2689_v8 = vsub.s32 2, %v390_v51  ;;  %v2691_v11 = vsub.s32 3, %v390_v51 }
 0x15d   :  { %v251_v19 = vmul.f32 %v247_v15, %v247_v15  ;;  %v252_v20 = vmul.f32 %v248_v16, %v248_v16  ;;  %v253_v21 = vmul.f32 %v249_v17, %v249_v17  ;;  %v254_v23 = vmul.f32 %v250_v18, %v250_v18 }
 0x15e   :  { %v441_v14 = vrot.slane %v2416_v53, %v2689_v8 }
 0x15f   :  { %v255_v22 = vadd.f32 %v252_v20, %v251_v19 }
 0x161   :  { %v256_v24 = vadd.f32 %v255_v22, %v253_v21  ;;  %v392_v22 = vrot.slane %v387_v4, %v2672_v58 }
 0x163   :  { %v257_v25 = vadd.f32 %v256_v24, %v254_v23  ;;  %v404_v23 = vrot.slane %v387_v4, %v2691_v11  ;;  %v400_v24 = vrot.slane %v387_v4, %v2689_v8  ;;  %v965_v4 = vrot.slane %v2426_v49, %v2689_v8 }
 0x165   :  { %258 = vadd.xlane.f32.xlu0 %v257_v25 }
 0x1ee   :  { %v259_v27 = vpop.xlane.xlu0 %258 }
 0x1ef   :  { %v260_v28 = vmul.f32 0.001953125, %v259_v27 }
 0x1f1   :  { %v261_v29 = vadd.f32 1e-05, %v260_v28  ;;  %v2422_v28 = vld [vmem:[%s3049_s1 + $0x8] sm:$0xf] }
 0x1f3   :  { %2471 = vrsqrt.f32 %v261_v29 }
 0x200   :  { %v2472_v31 = vpop.eup %2471 }
 0x201   :  { %v263_v32 = vmul.f32 %v2472_v31, %v239_v30 }
 0x203   :  { %266 = vperm.xlu1 %2467, %v263_v32  }
 0x207   :  { %275 = vperm.xlu1 %2467, %v240_v33   ;;  %v770_v33 = vrot.slane %v2422_v28, %v2668_v54 }
 0x27e   :  { %v267_v34 = vpop.permute.xlu1 %266 }
 0x27f   :  { %v269_v35 = vmul.f32 %v267_v34, %v247_v15  ;;  %v270_v36 = vmul.f32 %v267_v34, %v248_v16  ;;  %v271_v38 = vmul.f32 %v267_v34, %v249_v17  ;;  %v272_v39 = vmul.f32 %v267_v34, %v250_v18  ;;  %v413_v34 = vld [vmem:[%s3053_s5] sm:$0xff] }
 0x280   :  { %v445_v15 = vrot.slane %v2416_v53, %v2691_v11 }
 0x282   :  { %v276_v37 = vpop.permute.xlu1 %275 }
 0x283   :  { %v278_v40 = vadd.f32 %v276_v37, %v269_v35  ;;  %v279_v41 = vadd.f32 %v276_v37, %v270_v36  ;;  %v280_v42 = vadd.f32 %v276_v37, %v271_v38  ;;  %v281_v43 = vadd.f32 %v276_v37, %v272_v39 }
 0x285   :  { %v2609_v44 = vmax.f32 %v278_v40, 0.0  ;;  %v2611_v45 = vmax.f32 %v279_v41, 0.0  ;;  %v2620_v47 = vmax.f32 %v280_v42, 0.0  ;;  %v2622_v48 = vmax.f32 %v281_v43, 0.0 }
 0x286   :  { %v766_v40 = vrot.slane %v2422_v28, %v2672_v58  ;;  %v778_v41 = vrot.slane %v2422_v28, %v2691_v11  ;;  %v774_v42 = vrot.slane %v2422_v28, %v2689_v8 }
 0x287   :  { %416 = vrot.lane.b32.xlu1 %v2611_v45, %s2507_s3  ;;  %414 = vrot.lane.b32.xlu0 %v2609_v44, %s2507_s3 }
 0x28b   :  { %420 = vrot.lane.b32.xlu1 %v2622_v48, %s2507_s3  ;;  %376 = vrot.lane.b32.xlu0 %v2620_v47, %s2508_s18 }
 0x28f   :  { %372 = vrot.lane.b32.xlu1 %v2609_v44, %s2508_s18  ;;  %749 = vrot.lane.b32.xlu0 %v2611_v45, %s2509_s21 }
 0x293   :  { %374 = vrot.lane.b32.xlu1 %v2611_v45, %s2508_s18  ;;  %751 = vrot.lane.b32.xlu0 %v2620_v47, %s2509_s21 }
 0x297   :  { %418 = vrot.lane.b32.xlu1 %v2620_v47, %s2507_s3  ;;  %940 = vrot.lane.b32.xlu0 %v2611_v45, %s2510_s2 }
 0x29b   :  { %378 = vrot.lane.b32.xlu1 %v2622_v48, %s2508_s18  ;;  %942 = vrot.lane.b32.xlu0 %v2620_v47, %s2510_s2 }
 0x29f   :  { %747 = vrot.lane.b32.xlu1 %v2609_v44, %s2509_s21  ;;  %1311 = vrot.lane.b32.xlu0 %v2620_v47, %s2511_s22 }
 0x2a3   :  { %753 = vrot.lane.b32.xlu1 %v2622_v48, %s2509_s21  ;;  %1313 = vrot.lane.b32.xlu0 %v2622_v48, %s2511_s22 }
 0x2a7   :  { %938 = vrot.lane.b32.xlu1 %v2609_v44, %s2510_s2  ;;  %1502 = vrot.lane.b32.xlu0 %v2620_v47, %s2512_s23 }
 0x2ab   :  { %944 = vrot.lane.b32.xlu1 %v2622_v48, %s2510_s2  ;;  %1504 = vrot.lane.b32.xlu0 %v2622_v48, %s2512_s23 }
 0x2af   :  { %1309 = vrot.lane.b32.xlu1 %v2611_v45, %s2511_s22  ;;  %1693 = vrot.lane.b32.xlu0 %v2620_v47, %s2513_s24 }
 0x2b3   :  { %1307 = vrot.lane.b32.xlu1 %v2609_v44, %s2511_s22  ;;  %1695 = vrot.lane.b32.xlu0 %v2622_v48, %s2513_s24 }
 0x2b7   :  { %1500 = vrot.lane.b32.xlu1 %v2611_v45, %s2512_s23  ;;  %1884 = vrot.lane.b32.xlu0 %v2620_v47, %s2514_s25 }
 0x2bb   :  { %1498 = vrot.lane.b32.xlu1 %v2609_v44, %s2512_s23  ;;  %1886 = vrot.lane.b32.xlu0 %v2622_v48, %s2514_s25 }
 0x2bf   :  { %1691 = vrot.lane.b32.xlu1 %v2611_v45, %s2513_s24 }
 0x2c3   :  { %1689 = vrot.lane.b32.xlu1 %v2609_v44, %s2513_s24 }
 0x2c7   :  { %1882 = vrot.lane.b32.xlu1 %v2611_v45, %s2514_s25 }
 0x2cb   :  { %1880 = vrot.lane.b32.xlu1 %v2609_v44, %s2514_s25 }
 0x2f9   :  { %v417_v56 = vpop.permute.xlu1 %416  ;;  %v415_v57 = vpop.permute.xlu0 %414 }
 0x2fa   :  { %v425_v59 = vsel %vm422_vm2, %v415_v57, %v417_v56 }
 0x2fb   :  { %v451_v60 = vmul.f32 %v437_v55, %v425_v59  ;;  %v2423_v59 = vld [vmem:[%s3053_s5 + $0x10] sm:$0xff] }
 0x2fd   :  { %v421_v62 = vpop.permute.xlu1 %420  ;;  %490 = vmatprep.subr.mxu0 %v451_v60  ;;  %v377_v63 = vpop.permute.xlu0 %376 }
 0x2fe   :  { %v426_v0 = vsel %vm422_vm2, %v421_v62, %v415_v57  ;;  %v961_v57 = vrot.slane %v2426_v49, %v2668_v54 }
 0x2ff   :  { %v450_v1 = vmul.f32 %v433_v61, %v426_v0 }
 0x301   :  { %v373_v5 = vpop.permute.xlu1 %372  ;;  %491 = vmatpush1.msra.mxu0 %v450_v1  ;;  %v750_v6 = vpop.permute.xlu0 %749  ;;  %v957_v1 = vrot.slane %v2426_v49, %v2672_v58 }
 0x302   :  { %2418 = vmatmul.mubr.msk.f32.vlgmr.msra.gmra.mxu0 %vm456_vm3, %v2417_v2 }
 0x303   :  { %669 = vmatprep.mubr.f32.mxu0 %v2505_v3 }
 0x305   :  { %v375_v9 = vpop.permute.xlu1 %374  ;;  %v752_v10 = vpop.permute.xlu0 %751 }
 0x306   :  { %v385_v12 = vsel %vm382_vm4, %v373_v5, %v375_v9  ;;  %v384_v25 = vsel %vm382_vm4, %v375_v9, %v377_v63  ;;  %v757_v43 = vsel %vm755_vm5, %v750_v6, %v752_v10 }
 0x307   :  { %v410_v13 = vmul.f32 %v396_v7, %v385_v12  ;;  %v411_v35 = vmul.f32 %v400_v24, %v384_v25  ;;  %v785_v60 = vmul.f32 %v774_v42, %v757_v43  ;;  %v2434_v12 = vld [vmem:[%s3049_s1 + $0x14] sm:$0xf] }
 0x309   :  { %v419_v16 = vpop.permute.xlu1 %418  ;;  %635 = vmatprep.subr.mxu0 %v410_v13  ;;  %v2697_v17 = vpop.permute.xlu0 %940 }
 0x30a   :  { %v423_v18 = vsel %vm422_vm2, %v419_v16, %v421_v62  ;;  %v424_v19 = vsel %vm422_vm2, %v417_v56, %v419_v16 }
 0x30b   :  { %v452_v20 = vmul.f32 %v441_v14, %v424_v19  ;;  %v453_v21 = vmul.f32 %v445_v15, %v423_v18  ;;  %v1330_v19 = vrot.slane %v2434_v12, %v2668_v54 }
 0x30d   :  { %561 = vmatprep.subr.mxu1 %v453_v21  ;;  %v379_v26 = vpop.permute.xlu1 %378  ;;  %v943_v27 = vpop.permute.xlu0 %942 }
 0x30e   :  { %v383_v29 = vsel %vm382_vm4, %v377_v63, %v379_v26  ;;  %v386_v30 = vsel %vm382_vm4, %v379_v26, %v373_v5  ;;  %562 = vmatpush1.msra.mxu1 %v452_v20  ;;  %v2430_v63 = vld [vmem:[%s3049_s1 + $0x10] sm:$0xf]  ;;  %v2427_v20 = vld [vmem:[%s3053_s5 + $0x18] sm:$0xff] }
 0x30f   :  { %v409_v31 = vmul.f32 %v392_v22, %v386_v30  ;;  %v412_v32 = vmul.f32 %v404_v23, %v383_v29  ;;  %2419 = vmatmul.mubr.msk.f32.vlgmr.msra.gmra.mxu1 %vm456_vm3, %v2417_v2  ;;  %v969_v2 = vrot.slane %v2426_v49, %v2691_v11  ;;  %v1139_v9 = vrot.slane %v2430_v63, %v2668_v54 }
 0x310   :  { %740 = vmatprep.mubr.f32.mxu1 %v2505_v3  ;;  %v1135_v15 = vrot.slane %v2430_v63, %v2672_v58  ;;  %v1143_v16 = vrot.slane %v2430_v63, %v2689_v8  ;;  %v1326_v30 = vrot.slane %v2434_v12, %v2672_v58 }
 0x311   :  { %v748_v36 = vpop.permute.xlu1 %747  ;;  %636 = vmatpush1.msra.mxu0 %v409_v31  ;;  %706 = vmatprep.subr.mxu1 %v412_v32  ;;  %v2722_v37 = vpop.permute.xlu0 %1311  ;;  %v1153_v23 = vmul.f32 %v1139_v9, %v2611_v45  ;;  %v1338_v45 = vrot.slane %v2434_v12, %v2691_v11  ;;  %v1334_v31 = vrot.slane %v2434_v12, %v2689_v8  ;;  %v2438_v32 = vld [vmem:[%s3049_s1 + $0x18] sm:$0xf] }
 0x312   :  { %v758_v38 = vsel %vm755_vm5, %v748_v36, %v750_v6  ;;  %707 = vmatpush1.msra.mxu1 %v411_v35  ;;  %2420 = vmatmul.mubr.msk.f32.vlgmr.msra.gmra.mxu0 %vm456_vm3, %v413_v34  ;;  %v948_v6 = vsel %vm946_vm6, %v2697_v17, %v943_v27  ;;  %v1154_v28 = vmul.f32 %v1143_v16, %v2620_v47 }
 0x313   :  { %v784_v39 = vmul.f32 %v770_v33, %v758_v38  ;;  %2421 = vmatmul.mubr.msk.f32.vlgmr.msra.gmra.mxu1 %vm456_vm3, %v413_v34  ;;  %856 = vmatprep.mubr.f32.mxu0 %v2505_v3  ;;  %v976_v21 = vmul.f32 %v965_v4, %v948_v6  ;;  %v2435_v38 = vld [vmem:[%s3053_s5 + $0x28] sm:$0xff]  ;;  %v1529_v49 = vrot.slane %v2438_v32, %v2691_v11 }
 0x314   :  { %927 = vmatprep.mubr.f32.mxu1 %v2505_v3 }
 0x315   :  { %v754_v46 = vpop.permute.xlu1 %753  ;;  %822 = vmatprep.subr.mxu0 %v784_v39  ;;  %v2742_v53 = vpop.permute.xlu0 %1313 }
 0x316   :  { %v756_v50 = vsel %vm755_vm5, %v752_v10, %v754_v46  ;;  %v759_v51 = vsel %vm755_vm5, %v754_v46, %v748_v36  ;;  %v1147_v10 = vrot.slane %v2430_v63, %v2691_v11  ;;  %v1517_v46 = vrot.slane %v2438_v32, %v2672_v58  ;;  %v2439_v63 = vld [vmem:[%s3053_s5 + $0x30] sm:$0xff] }
 0x317   :  { %v783_v55 = vmul.f32 %v766_v40, %v759_v51  ;;  %v786_v56 = vmul.f32 %v778_v41, %v756_v50  ;;  %v1525_v50 = vrot.slane %v2438_v32, %v2689_v8 }
 0x318   :  { %v1155_v24 = vmul.f32 %v1147_v10, %v2622_v48  ;;  %v2431_v48 = vld [vmem:[%s3053_s5 + $0x20] sm:$0xff] }
 0x319   :  { %v939_v61 = vpop.permute.xlu1 %938  ;;  %823 = vmatpush1.msra.mxu0 %v783_v55  ;;  %893 = vmatprep.subr.mxu1 %v786_v56  ;;  %v2761_v5 = vpop.permute.xlu0 %1502  ;;  %v2442_v55 = vld [vmem:[%s3049_s1 + $0x1c] sm:$0xf] }
 0x31a   :  { %v949_v62 = vsel %vm946_vm6, %v939_v61, %v2697_v17  ;;  %894 = vmatpush1.msra.mxu1 %v785_v60  ;;  %2424 = vmatmul.mubr.msk.f32.vlgmr.msra.gmra.mxu0 %vm456_vm3, %v2423_v59  ;;  %v1720_v6 = vrot.slane %v2442_v55, %v2691_v11 }
 0x31b   :  { %v975_v0 = vmul.f32 %v961_v57, %v949_v62  ;;  %2425 = vmatmul.mubr.msk.f32.vlgmr.msra.gmra.mxu1 %vm456_vm3, %v2423_v59  ;;  %1047 = vmatprep.mubr.f32.mxu0 %v2505_v3  ;;  %v1712_v62 = vrot.slane %v2442_v55, %v2668_v54 }
 0x31c   :  { %1118 = vmatprep.mubr.f32.mxu1 %v2505_v3 }
 0x31d   :  { %v945_v7 = vpop.permute.xlu1 %944  ;;  %1013 = vmatprep.subr.mxu0 %v975_v0  ;;  %v1505_v25 = vpop.permute.xlu0 %1504 }
 0x31e   :  { %v947_v13 = vsel %vm946_vm6, %v943_v27, %v945_v7  ;;  %v950_v14 = vsel %vm946_vm6, %v945_v7, %v939_v61  ;;  %v1152_v27 = vmul.f32 %v1135_v15, %v2609_v44  ;;  %v1316_v44 = vsel %vm1315_vm7, %v2722_v37, %v2742_v53 }
 0x31f   :  { %v974_v17 = vmul.f32 %v957_v1, %v950_v14  ;;  %v977_v18 = vmul.f32 %v969_v2, %v947_v13  ;;  %v1345_v39 = vmul.f32 %v1334_v31, %v1316_v44  ;;  %v1507_v51 = vsel %vm1506_vm8, %v2761_v5, %v1505_v25  ;;  %v2446_v13 = vld [vmem:[%s3049_s1 + $0x20] sm:$0xf]  ;;  %v2895_v31 = vpop.f32.mrf.mxu1 }
 0x320   :  { %v1536_v0 = vmul.f32 %v1525_v50, %v1507_v51  ;;  %v1716_v7 = vrot.slane %v2442_v55, %v2689_v8 }
 0x321   :  { %v1310_v22 = vpop.permute.xlu1 %1309  ;;  %1014 = vmatpush1.msra.mxu0 %v974_v17  ;;  %1084 = vmatprep.subr.mxu1 %v977_v18  ;;  %v1694_v40 = vpop.permute.xlu0 %1693  ;;  %v1903_v18 = vrot.slane %v2446_v13, %v2668_v54 }
 0x322   :  { %v1317_v26 = vsel %vm1315_vm7, %v1310_v22, %v2722_v37  ;;  %2428 = vmatmul.mubr.msk.f32.vlgmr.msra.gmra.mxu0 %vm456_vm3, %v2427_v20  ;;  %1085 = vmatpush1.msra.mxu1 %v976_v21  ;;  %v1521_v37 = vrot.slane %v2438_v32, %v2668_v54  ;;  %v1899_v54 = vrot.slane %v2446_v13, %v2672_v58 }
 0x323   :  { %v1344_v29 = vmul.f32 %v1330_v19, %v1317_v26  ;;  %1191 = vmatprep.subr.mxu0 %v1153_v23  ;;  %1262 = vmatprep.subr.mxu1 %v1155_v24  ;;  %v2443_v19 = vld [vmem:[%s3053_s5 + $0x38] sm:$0xff]  ;;  %v1907_v26 = vrot.slane %v2446_v13, %v2689_v8 }
 0x324   :  { %1192 = vmatpush1.msra.mxu0 %v1152_v27  ;;  %2429 = vmatmul.mubr.msk.f32.vlgmr.msra.gmra.mxu1 %vm456_vm3, %v2427_v20 }
 0x325   :  { %1263 = vmatpush1.msra.mxu1 %v1154_v28  ;;  %v1308_v47 = vpop.permute.xlu1 %1307  ;;  %1225 = vmatprep.mubr.f32.mxu0 %v2505_v3  ;;  %v1696_v56 = vpop.permute.xlu0 %1695 }
 0x326   :  { %v1318_v33 = vsel %vm1315_vm7, %v1308_v47, %v1310_v22  ;;  %v1319_v34 = vsel %vm1315_vm7, %v2742_v53, %v1308_v47  ;;  %1382 = vmatprep.subr.mxu0 %v1344_v29  ;;  %2432 = vmatmul.mubr.msk.f32.vlgmr.msra.gmra.mxu0 %vm456_vm3, %v2431_v48  ;;  %v1698_v10 = vsel %vm1697_vm9, %v1694_v40, %v1696_v56  ;;  %v2899_v47 = vpop.f32.mrf.mxu1 }
 0x327   :  { %v1343_v35 = vmul.f32 %v1326_v30, %v1318_v33  ;;  %v1346_v36 = vmul.f32 %v1338_v45, %v1319_v34  ;;  %1296 = vmatprep.mubr.f32.mxu1 %v2505_v3  ;;  %1416 = vmatprep.mubr.f32.mxu0 %v2505_v3  ;;  %v1727_v20 = vmul.f32 %v1716_v7, %v1698_v10 }
 0x328   :  { %2433 = vmatmul.mubr.msk.f32.vlgmr.msra.gmra.mxu1 %vm456_vm3, %v2431_v48  ;;  %v2893_v48 = vpop.f32.mrf.mxu0  ;;  %v2903_v33 = vpop.f32.mrf.mxu1 }
 0x329   :  { %v1501_v41 = vpop.permute.xlu1 %1500  ;;  %1453 = vmatprep.subr.mxu1 %v1346_v36  ;;  %1383 = vmatpush1.msra.mxu0 %v1343_v35  ;;  %v1885_v9 = vpop.permute.xlu0 %1884 }
 0x32a   :  { %v1508_v42 = vsel %vm1506_vm8, %v1501_v41, %v2761_v5  ;;  %2436 = vmatmul.mubr.msk.f32.vlgmr.msra.gmra.mxu0 %vm456_vm3, %v2435_v38  ;;  %1454 = vmatpush1.msra.mxu1 %v1345_v39  ;;  %v1708_v5 = vrot.slane %v2442_v55, %v2672_v58  ;;  %v2897_v44 = vpop.f32.mrf.mxu0  ;;  %v2905_v35 = vpop.f32.mrf.mxu1 }
 0x32b   :  { %v1535_v43 = vmul.f32 %v1521_v37, %v1508_v42  ;;  %1487 = vmatprep.mubr.f32.mxu1 %v2505_v3  ;;  %1607 = vmatprep.mubr.f32.mxu0 %v2505_v3 }
 0x32c   :  { %2437 = vmatmul.mubr.msk.f32.vlgmr.msra.gmra.mxu1 %vm456_vm3, %v2435_v38  ;;  %v2901_v32 = vpop.f32.mrf.mxu0 }
 0x32d   :  { %v1499_v53 = vpop.permute.xlu1 %1498  ;;  %1573 = vmatprep.subr.mxu0 %v1535_v43  ;;  %1678 = vmatprep.mubr.f32.mxu1 %v2505_v3  ;;  %v1887_v22 = vpop.permute.xlu0 %1886 }
 0x32e   :  { %v1509_v57 = vsel %vm1506_vm8, %v1499_v53, %v1501_v41  ;;  %v1510_v59 = vsel %vm1506_vm8, %v1505_v25, %v1499_v53  ;;  %v1911_v25 = vrot.slane %v2446_v13, %v2691_v11  ;;  %v1889_v27 = vsel %vm1888_vm10, %v1885_v9, %v1887_v22  ;;  %v2447_v11 = vld [vmem:[%s3053_s5 + $0x40] sm:$0xff] }
 0x32f   :  { %v1534_v60 = vmul.f32 %v1517_v46, %v1509_v57  ;;  %v1537_v61 = vmul.f32 %v1529_v49, %v1510_v59  ;;  %v1918_v8 = vmul.f32 %v1907_v26, %v1889_v27 }
 0x331   :  { %v1692_v1 = vpop.permute.xlu1 %1691  ;;  %1574 = vmatpush1.msra.mxu0 %v1534_v60  ;;  %1644 = vmatprep.subr.mxu1 %v1537_v61 }
 0x332   :  { %v1699_v2 = vsel %vm1697_vm9, %v1692_v1, %v1694_v40  ;;  %2440 = vmatmul.mubr.msk.f32.vlgmr.msra.gmra.mxu0 %vm456_vm3, %v2439_v63  ;;  %1645 = vmatpush1.msra.mxu1 %v1536_v0 }
 0x333   :  { %v1726_v4 = vmul.f32 %v1712_v62, %v1699_v2  ;;  %2441 = vmatmul.mubr.msk.f32.vlgmr.msra.gmra.mxu1 %vm456_vm3, %v2439_v63  ;;  %1798 = vmatprep.mubr.f32.mxu0 %v2505_v3 }
 0x334   :  { %1869 = vmatprep.mubr.f32.mxu1 %v2505_v3 }
 0x335   :  { %v1690_v12 = vpop.permute.xlu1 %1689  ;;  %1764 = vmatprep.subr.mxu0 %v1726_v4 }
 0x336   :  { %v1700_v14 = vsel %vm1697_vm9, %v1690_v12, %v1692_v1  ;;  %v1701_v15 = vsel %vm1697_vm9, %v1696_v56, %v1690_v12 }
 0x337   :  { %v1725_v16 = vmul.f32 %v1708_v5, %v1700_v14  ;;  %v1728_v17 = vmul.f32 %v1720_v6, %v1701_v15 }
 0x339   :  { %v1883_v21 = vpop.permute.xlu1 %1882  ;;  %1765 = vmatpush1.msra.mxu0 %v1725_v16  ;;  %1835 = vmatprep.subr.mxu1 %v1728_v17 }
 0x33a   :  { %v1890_v23 = vsel %vm1888_vm10, %v1883_v21, %v1885_v9  ;;  %2444 = vmatmul.mubr.msk.f32.vlgmr.msra.gmra.mxu0 %vm456_vm3, %v2443_v19  ;;  %1836 = vmatpush1.msra.mxu1 %v1727_v20 }
 0x33b   :  { %v1917_v24 = vmul.f32 %v1903_v18, %v1890_v23  ;;  %2445 = vmatmul.mubr.msk.f32.vlgmr.msra.gmra.mxu1 %vm456_vm3, %v2443_v19  ;;  %1989 = vmatprep.mubr.f32.mxu0 %v2505_v3 }
 0x33c   :  { %2060 = vmatprep.mubr.f32.mxu1 %v2505_v3 }
 0x33d   :  { %v1881_v28 = vpop.permute.xlu1 %1880  ;;  %1955 = vmatprep.subr.mxu0 %v1917_v24 }
 0x33e   :  { %v1891_v29 = vsel %vm1888_vm10, %v1881_v28, %v1883_v21  ;;  %v1892_v30 = vsel %vm1888_vm10, %v1887_v22, %v1881_v28 }
 0x33f   :  { %v1916_v58 = vmul.f32 %v1899_v54, %v1891_v29  ;;  %v1919_v45 = vmul.f32 %v1911_v25, %v1892_v30 }
 0x341   :  { %1956 = vmatpush1.msra.mxu0 %v1916_v58  ;;  %2026 = vmatprep.subr.mxu1 %v1919_v45 }
 0x342   :  { %2448 = vmatmul.mubr.msk.f32.vlgmr.msra.gmra.mxu0 %vm456_vm3, %v2447_v11  ;;  %2027 = vmatpush1.msra.mxu1 %v1918_v8 }
 0x343   :  { %2449 = vmatmul.mubr.msk.f32.vlgmr.msra.gmra.mxu1 %vm456_vm3, %v2447_v11  ;;  %2190 = vmatprep.mubr.f32.mxu0 %v2505_v3 }
 0x344   :  { %2267 = vmatprep.mubr.f32.mxu1 %v2505_v3 }
 0x3c2   :  { %v526_v34 = vpop.f32.mrf.mxu0 }
 0x3c4   :  { %v528_v36 = vpop.f32.mrf.mxu0 }
 0x3cf   :  { %v597_v37 = vpop.f32.mrf.mxu1 }
 0x3d1   :  { %v599_v38 = vpop.f32.mrf.mxu1 }
 0x3d2   :  { %v671_v39 = vpop.f32.mrf.mxu0 }
 0x3d3   :  { %v742_v40 = vpop.f32.mrf.mxu1  ;;  %v672_v62 = vadd.f32 %v671_v39, %v526_v34 }
 0x3d4   :  { %v673_v41 = vpop.f32.mrf.mxu0  ;;  %v743_v1 = vadd.f32 %v742_v40, %v597_v37 }
 0x3d5   :  { %v744_v42 = vpop.f32.mrf.mxu1  ;;  %v674_v0 = vadd.f32 %v673_v41, %v528_v36 }
 0x3d6   :  { %v745_v4 = vadd.f32 %v744_v42, %v599_v38 }
 0x3da   :  { %v858_v43 = vpop.f32.mrf.mxu0 }
 0x3db   :  { %v929_v46 = vpop.f32.mrf.mxu1  ;;  %v934_v5 = vadd.f32 %v858_v43, %v672_v62 }
 0x3dc   :  { %v860_v49 = vpop.f32.mrf.mxu0  ;;  %v936_v9 = vadd.f32 %v929_v46, %v743_v1 }
 0x3dd   :  { %v931_v50 = vpop.f32.mrf.mxu1  ;;  %v935_v7 = vadd.f32 %v860_v49, %v674_v0 }
 0x3de   :  { %v937_v13 = vadd.f32 %v931_v50, %v745_v4 }
 0x3e2   :  { %v1049_v51 = vpop.f32.mrf.mxu0 }
 0x3e3   :  { %v1125_v14 = vadd.f32 %v1049_v51, %v934_v5 }
 0x3e4   :  { %v1051_v53 = vpop.f32.mrf.mxu0  ;;  %v1120_v55 = vpop.f32.mrf.mxu1 }
 0x3e5   :  { %v1126_v16 = vadd.f32 %v1051_v53, %v935_v7  ;;  %v1127_v17 = vadd.f32 %v1120_v55, %v936_v9 }
 0x3e6   :  { %v1122_v56 = vpop.f32.mrf.mxu1  ;;  %v1227_v57 = vpop.f32.mrf.mxu0 }
 0x3e7   :  { %v1128_v19 = vadd.f32 %v1122_v56, %v937_v13  ;;  %v1303_v20 = vadd.f32 %v1227_v57, %v1125_v14  ;;  %v2072_v57 = vld [vmem:[%s3055_s7] sm:$0xff] }
 0x3e8   :  { %v1298_v59 = vpop.f32.mrf.mxu1  ;;  %v1229_v60 = vpop.f32.mrf.mxu0 }
 0x3e9   :  { %v1304_v23 = vadd.f32 %v1229_v60, %v1126_v16  ;;  %v1305_v24 = vadd.f32 %v1298_v59, %v1127_v17  ;;  %v290_v59 = vadd.f32 %v2893_v48, %v2891_v52  ;;  %v2071_v17 = vld [vmem:[%s3054_s6] sm:$0xff] }
 0x3ea   :  { %v1300_v61 = vpop.f32.mrf.mxu1  ;;  %v1418_v63 = vpop.f32.mrf.mxu0 }
 0x3eb   :  { %v1306_v25 = vadd.f32 %v1300_v61, %v1128_v19  ;;  %v1494_v26 = vadd.f32 %v1418_v63, %v1303_v20  ;;  %v291_v60 = vadd.f32 %v290_v59, %v2895_v31  ;;  %v295_v20 = vadd.f32 %v2901_v32, %v2897_v44 }
 0x3ec   :  { %v1489_v2 = vpop.f32.mrf.mxu1  ;;  %v1420_v6 = vpop.f32.mrf.mxu0 }
 0x3ed   :  { %v1495_v27 = vadd.f32 %v1420_v6, %v1304_v23  ;;  %v1496_v29 = vadd.f32 %v1489_v2, %v1305_v24  ;;  %v292_v61 = vadd.f32 %v291_v60, %v2899_v47 }
 0x3ee   :  { %v1491_v10 = vpop.f32.mrf.mxu1 }
 0x3ef   :  { %v1497_v8 = vadd.f32 %v1491_v10, %v1306_v25 }
 0x3f2   :  { %v1609_v12 = vpop.f32.mrf.mxu0 }
 0x3f3   :  { %v1680_v15 = vpop.f32.mrf.mxu1  ;;  %v1685_v30 = vadd.f32 %v1609_v12, %v1494_v26 }
 0x3f4   :  { %v1611_v18 = vpop.f32.mrf.mxu0  ;;  %v1687_v34 = vadd.f32 %v1680_v15, %v1496_v29 }
 0x3f5   :  { %v1682_v21 = vpop.f32.mrf.mxu1  ;;  %v1686_v58 = vadd.f32 %v1611_v18, %v1495_v27 }
 0x3f6   :  { %v1688_v40 = vadd.f32 %v1682_v21, %v1497_v8  ;;  %v296_v21 = vadd.f32 %v295_v20, %v2903_v33 }
 0x3fa   :  { %v1800_v22 = vpop.f32.mrf.mxu0 }
 0x3fb   :  { %v1871_v54 = vpop.f32.mrf.mxu1  ;;  %v1876_v36 = vadd.f32 %v1800_v22, %v1685_v30  ;;  %v297_v22 = vadd.f32 %v296_v21, %v2905_v35 }
 0x3fc   :  { %v1802_v28 = vpop.f32.mrf.mxu0  ;;  %v1878_v41 = vadd.f32 %v1871_v54, %v1687_v34 }
 0x3fd   :  { %v1873_v45 = vpop.f32.mrf.mxu1  ;;  %v1877_v37 = vadd.f32 %v1802_v28, %v1686_v58 }
 0x3fe   :  { %v1879_v49 = vadd.f32 %v1873_v45, %v1688_v40 }
 0x402   :  { %v1991_v11 = vpop.f32.mrf.mxu0 }
 0x403   :  { %v2062_v38 = vpop.f32.mrf.mxu1  ;;  %v2067_v42 = vadd.f32 %v1991_v11, %v1876_v36  ;;  %v2118_v36 = vld [vmem:[%s3056_s8] sm:$0xff] }
 0x404   :  { %v1993_v39 = vpop.f32.mrf.mxu0  ;;  %v2069_v50 = vadd.f32 %v2062_v38, %v1878_v41 }
 0x405   :  { %v2068_v43 = vadd.f32 %v1993_v39, %v1877_v37  ;;  %v2064_v46 = vpop.f32.mrf.mxu1  ;;  %v2119_v37 = vld [vmem:[%s3056_s8 + $0x8] sm:$0xff] }
 0x406   :  { %v2070_v53 = vadd.f32 %v2064_v46, %v1879_v49 }
 0x407   :  { %v2073_v51 = vadd.f32 %v2068_v43, %v2067_v42 }
 0x409   :  { %v2074_v55 = vadd.f32 %v2073_v51, %v2069_v50 }
 0x40b   :  { %v2075_v56 = vadd.f32 %v2074_v55, %v2070_v53 }
 0x40d   :  { %2076 = vadd.xlane.f32.xlu1 %v2075_v56 }
 0x41e   :  { %2107 = vperm.xlu1 %2467, %v2072_v57  }
 0x442   :  { %293 = vadd.xlane.f32.xlu1 %v292_v61 }
 0x496   :  { %v2077_v62 = vpop.xlane.xlu1 %2076 }
 0x497   :  { %v2078_v63 = vmul.f32 0.001953125, %v2077_v62 }
 0x499   :  { %v2079_v0 = vsub.f32 %v2067_v42, %v2078_v63  ;;  %v2080_v1 = vsub.f32 %v2068_v43, %v2078_v63  ;;  %v2081_v2 = vsub.f32 %v2069_v50, %v2078_v63  ;;  %v2082_v4 = vsub.f32 %v2070_v53, %v2078_v63 }
 0x49a   :  { %v2108_v27 = vpop.permute.xlu1 %2107 }
 0x49b   :  { %v2083_v5 = vmul.f32 %v2079_v0, %v2079_v0  ;;  %v2084_v6 = vmul.f32 %v2080_v1, %v2080_v1  ;;  %v2085_v7 = vmul.f32 %v2081_v2, %v2081_v2  ;;  %v2086_v10 = vmul.f32 %v2082_v4, %v2082_v4 }
 0x49d   :  { %v2087_v9 = vadd.f32 %v2084_v6, %v2083_v5 }
 0x49f   :  { %v2088_v12 = vadd.f32 %v2087_v9, %v2085_v7 }
 0x4a1   :  { %v2089_v13 = vadd.f32 %v2088_v12, %v2086_v10 }
 0x4a3   :  { %2090 = vadd.xlane.f32.xlu0 %v2089_v13 }
 0x4cb   :  { %v294_v38 = vpop.xlane.xlu1 %293 }
 0x4cc   :  { %v300_v39 = vmul.f32 0.001953125, %v294_v38 }
 0x4ce   :  { %v2934_v41 = vsub.f32 %v2891_v52, %v300_v39  ;;  %v2937_v42 = vsub.f32 %v2893_v48, %v300_v39  ;;  %v2950_v59 = vsub.f32 %v2895_v31, %v300_v39 }
 0x4d0   :  { %v311_v53 = vmul.f32 %v2937_v42, %v2937_v42  ;;  %v312_v31 = vmul.f32 %v2950_v59, %v2950_v59 }
 0x52c   :  { %v2091_v14 = vpop.xlane.xlu0 %2090 }
 0x52d   :  { %v2092_v15 = vmul.f32 0.001953125, %v2091_v14 }
 0x52f   :  { %v2093_v16 = vadd.f32 1e-05, %v2092_v15 }
 0x531   :  { %2473 = vrsqrt.f32 %v2093_v16 }
 0x53e   :  { %v2474_v18 = vpop.eup %2473 }
 0x53f   :  { %v2095_v19 = vmul.f32 %v2474_v18, %v2071_v17 }
 0x541   :  { %2098 = vperm.xlu0 %2468, %v2095_v19  }
 0x560   :  { %298 = vadd.xlane.f32.xlu0 %v297_v22 }
 0x5bc   :  { %v2099_v23 = vpop.permute.xlu0 %2098 }
 0x5bd   :  { %v2101_v24 = vmul.f32 %v2099_v23, %v2079_v0  ;;  %v2102_v54 = vmul.f32 %v2099_v23, %v2080_v1  ;;  %v2103_v25 = vmul.f32 %v2099_v23, %v2081_v2  ;;  %v2104_v26 = vmul.f32 %v2099_v23, %v2082_v4 }
 0x5bf   :  { %v2110_v28 = vadd.f32 %v2108_v27, %v2101_v24  ;;  %v2112_v29 = vadd.f32 %v2108_v27, %v2103_v25  ;;  %v2111_v30 = vadd.f32 %v2108_v27, %v2102_v54  ;;  %v2113_v58 = vadd.f32 %v2108_v27, %v2104_v26 }
 0x5c1   :  { %v2115_v45 = vmax.f32 %v2111_v30, 0.0  ;;  %v2117_v11 = vmax.f32 %v2113_v58, 0.0  ;;  %v2114_v8 = vmax.f32 %v2110_v28, 0.0  ;;  %v2116_v34 = vmax.f32 %v2112_v29, 0.0 }
 0x5c3   :  { %2156 = vmatprep.subr.mxu0 %v2115_v45  ;;  %2233 = vmatprep.subr.mxu1 %v2117_v11 }
 0x5c4   :  { %2157 = vmatpush1.msra.mxu0 %v2114_v8  ;;  %2234 = vmatpush1.msra.mxu1 %v2116_v34 }
 0x5c5   :  { %2450 = vmatmul.mubr.msk.f32.vlgmr.msra.gmra.mxu0 %vm456_vm3, %v2118_v36  ;;  %2452 = vmatmul.mubr.msk.f32.vlgmr.msra.gmra.mxu1 %vm456_vm3, %v2118_v36 }
 0x5c6   :  { %2196 = vmatprep.mubr.f32.mxu0 %v2505_v3  ;;  %2273 = vmatprep.mubr.f32.mxu1 %v2505_v3  ;;  %v310_v3 = vmul.f32 %v2934_v41, %v2934_v41 }
 0x5c8   :  { %v318_v62 = vadd.f32 %v311_v53, %v310_v3  ;;  %v286_v3 = vld [vmem:[%s3059_s11] sm:$0xff] }
 0x5c9   :  { %2451 = vmatmul.mubr.msk.f32.gmra.mxu0 %vm456_vm3, %v2119_v37  ;;  %2453 = vmatmul.mubr.msk.f32.gmra.mxu1 %vm456_vm3, %v2119_v37 }
 0x5ca   :  { %v319_v7 = vadd.f32 %v318_v62, %v312_v31  ;;  %v288_v62 = vld [vmem:[%s3060_s12] sm:$0xff] }
 0x5e9   :  { %v299_v40 = vpop.xlane.xlu0 %298 }
 0x5ea   :  { %v301_v43 = vmul.f32 0.001953125, %v299_v40 }
 0x5ec   :  { %v2944_v55 = vsub.f32 %v2897_v44, %v301_v43  ;;  %v2947_v52 = vsub.f32 %v2901_v32, %v301_v43  ;;  %v2957_v32 = vsub.f32 %v2899_v47, %v300_v39  ;;  %v2962_v4 = vsub.f32 %v2903_v33, %v301_v43 }
 0x5ed   :  { %v2967_v12 = vsub.f32 %v2905_v35, %v301_v43 }
 0x5ee   :  { %v314_v1 = vmul.f32 %v2944_v55, %v2944_v55  ;;  %v315_v44 = vmul.f32 %v2947_v52, %v2947_v52  ;;  %v313_v10 = vmul.f32 %v2957_v32, %v2957_v32  ;;  %v316_v47 = vmul.f32 %v2962_v4, %v2962_v4 }
 0x5ef   :  { %v317_v33 = vmul.f32 %v2967_v12, %v2967_v12 }
 0x5f0   :  { %v323_v9 = vadd.f32 %v315_v44, %v314_v1  ;;  %v320_v13 = vadd.f32 %v319_v7, %v313_v10  ;;  %v2281_v10 = vld [vmem:[%s3057_s9 + $0x8] sm:$0xff] }
 0x5f2   :  { %v324_v14 = vadd.f32 %v323_v9, %v316_v47 }
 0x5f4   :  { %v325_v15 = vadd.f32 %v324_v14, %v317_v33  ;;  %v2283_v14 = vld [vmem:[%s3058_s10 + $0x8] sm:$0xff] }
 0x685   :  { %v2192_v46 = vpop.f32.mrf.mxu0  ;;  %v2269_v49 = vpop.f32.mrf.mxu1 }
 0x687   :  { %v2194_v50 = vpop.f32.mrf.mxu0  ;;  %v2271_v51 = vpop.f32.mrf.mxu1 }
 0x688   :  { %v2284_v56 = vadd.f32 %v2194_v50, %v2192_v46 }
 0x689   :  { %v2198_v48 = vpop.f32.mrf.mxu0  ;;  %v2275_v61 = vpop.f32.mrf.mxu1 }
 0x68a   :  { %v2285_v57 = vadd.f32 %v2284_v56, %v2269_v49 }
 0x68b   :  { %v2200_v60 = vpop.f32.mrf.mxu0  ;;  %v2277_v5 = vpop.f32.mrf.mxu1 }
 0x68c   :  { %v2289_v63 = vadd.f32 %v2200_v60, %v2198_v48  ;;  %v2286_v0 = vadd.f32 %v2285_v57, %v2271_v51 }
 0x68e   :  { %v2290_v2 = vadd.f32 %v2289_v63, %v2275_v61  ;;  %2287 = vadd.xlane.f32.xlu1 %v2286_v0  ;;  %v2282_v63 = vld [vmem:[%s3058_s10] sm:$0xff] }
 0x690   :  { %v2291_v6 = vadd.f32 %v2290_v2, %v2277_v5 }
 0x692   :  { %2292 = vadd.xlane.f32.xlu1 %v2291_v6  ;;  %v2280_v6 = vld [vmem:[%s3057_s9] sm:$0xff]  ;;  %s2515_s9 = smov [#allocation2]  }
 0x693   :  { %s2395_s10 = sshll.u32 %s2515_s9, 4  ;;  %s2396_s10 = int_to_ptr.vmem [resolvable:$true] %s2395_s10 }
 0x694   :  { %s2483_s17 = scalar_lea.vmem %s2396_s10, 1024  ;;  %p2488_p1 = scmp.lt.s32.totalorder %s2396_s10, %s2396_s10 }
 0x695   :  { %p2484_p0 = scmp.ne.s32.totalorder %s2396_s10, %s2483_s17  ;;  %p2489_p2 = scmp.lt.s32.totalorder %s2483_s17, %s2483_s17 }
 0x696   :  { %321 = vadd.xlane.f32.xlu1 %v320_v13 }
 0x697   :  { %p2490_p3 = por %p2489_p2, %p2488_p1 }
 0x699   :  { %p2491_p4 = pnand %p2490_p3, %p2484_p0 }
 0x69a   :  { %326 = vadd.xlane.f32.xlu1 %v325_v15 }
 0x717   :  { %v2288_v16 = vpop.xlane.xlu1 %2287 }
 0x718   :  { %v2294_v17 = vmul.f32 0.001953125, %v2288_v16 }
 0x71a   :  { %v2973_v18 = vsub.f32 %v2192_v46, %v2294_v17  ;;  %v2975_v19 = vsub.f32 %v2194_v50, %v2294_v17  ;;  %v2977_v20 = vsub.f32 %v2269_v49, %v2294_v17  ;;  %v2979_v21 = vsub.f32 %v2271_v51, %v2294_v17 }
 0x71b   :  { %v2293_v35 = vpop.xlane.xlu1 %2292 }
 0x71c   :  { %v2295_v22 = vmul.f32 0.001953125, %v2293_v35  ;;  %v2304_v23 = vmul.f32 %v2973_v18, %v2973_v18  ;;  %v2305_v24 = vmul.f32 %v2975_v19, %v2975_v19  ;;  %v2306_v54 = vmul.f32 %v2977_v20, %v2977_v20 }
 0x71d   :  { %v2307_v30 = vmul.f32 %v2979_v21, %v2979_v21 }
 0x71e   :  { %v2987_v25 = vsub.f32 %v2198_v48, %v2295_v22  ;;  %v2989_v26 = vsub.f32 %v2200_v60, %v2295_v22  ;;  %v2312_v27 = vadd.f32 %v2305_v24, %v2304_v23  ;;  %v2991_v28 = vsub.f32 %v2275_v61, %v2295_v22  ;;  %v289_v48 = vld [vmem:[%s3060_s12 + $0x8] sm:$0xff] }
 0x71f   :  { %v322_v29 = vpop.xlane.xlu1 %321  ;;  %v2995_v58 = vsub.f32 %v2277_v5, %v2295_v22  ;;  %v287_v60 = vld [vmem:[%s3059_s11 + $0x8] sm:$0xff] }
 0x720   :  { %v328_v45 = vmul.f32 0.001953125, %v322_v29  ;;  %v2313_v11 = vadd.f32 %v2312_v27, %v2306_v54  ;;  %v2308_v8 = vmul.f32 %v2987_v25, %v2987_v25  ;;  %v2309_v34 = vmul.f32 %v2989_v26, %v2989_v26 }
 0x721   :  { %v2310_v38 = vmul.f32 %v2991_v28, %v2991_v28  ;;  %v2311_v46 = vmul.f32 %v2995_v58, %v2995_v58 }
 0x722   :  { %v330_v36 = vadd.f32 1e-05, %v328_v45  ;;  %v2314_v37 = vadd.f32 %v2313_v11, %v2307_v30  ;;  %v2317_v39 = vadd.f32 %v2309_v34, %v2308_v8 }
 0x723   :  { %v327_v40 = vpop.xlane.xlu1 %326 }
 0x724   :  { %2475 = vrsqrt.f32 %v330_v36  ;;  %v329_v43 = vmul.f32 0.001953125, %v327_v40  ;;  %2315 = vadd.xlane.f32.xlu1 %v2314_v37  ;;  %v2318_v49 = vadd.f32 %v2317_v39, %v2310_v38 }
 0x726   :  { %v2319_v50 = vadd.f32 %v2318_v49, %v2311_v46  ;;  %v331_v51 = vadd.f32 1e-05, %v329_v43 }
 0x728   :  { %2320 = vadd.xlane.f32.xlu0 %v2319_v50  ;;  %2477 = vrsqrt.f32 %v331_v51 }
 0x731   :  { %v2476_v53 = vpop.eup %2475 }
 0x732   :  { %v334_v56 = vmul.f32 %v2476_v53, %v286_v3 }
 0x735   :  { %338 = vperm.xlu1 %2467, %v334_v56   ;;  %v2478_v57 = vpop.eup %2477 }
 0x736   :  { %v335_v61 = vmul.f32 %v2478_v57, %v287_v60 }
 0x739   :  { %361 = vperm.xlu1 %2467, %v289_v48  }
 0x73e   :  { %343 = vperm.xlu0 %2468, %v335_v61  }
 0x742   :  { %356 = vperm.xlu0 %2468, %v288_v62  }
 0x746   :  { %2350 = vperm.xlu0 %2468, %v2282_v63  }
 0x7ad   :  { %v2316_v0 = vpop.xlane.xlu1 %2315 }
 0x7ae   :  { %v2322_v1 = vmul.f32 0.001953125, %v2316_v0 }
 0x7b0   :  { %v2324_v44 = vadd.f32 1e-05, %v2322_v1 }
 0x7b1   :  { %v2321_v2 = vpop.xlane.xlu0 %2320  ;;  %v339_v33 = vpop.permute.xlu1 %338 }
 0x7b2   :  { %2479 = vrsqrt.f32 %v2324_v44  ;;  %v2323_v31 = vmul.f32 0.001953125, %v2321_v2  ;;  %v346_v35 = vmul.f32 %v339_v33, %v2934_v41  ;;  %v347_v22 = vmul.f32 %v339_v33, %v2937_v42 }
 0x7b3   :  { %v348_v23 = vmul.f32 %v339_v33, %v2950_v59  ;;  %v349_v24 = vmul.f32 %v339_v33, %v2957_v32 }
 0x7b4   :  { %v2325_v5 = vadd.f32 1e-05, %v2323_v31 }
 0x7b5   :  { %v362_v16 = vpop.permute.xlu1 %361 }
 0x7b6   :  { %2481 = vrsqrt.f32 %v2325_v5 }
 0x7b9   :  { %v344_v15 = vpop.permute.xlu0 %343 }
 0x7ba   :  { %v350_v32 = vmul.f32 %v344_v15, %v2944_v55  ;;  %v351_v39 = vmul.f32 %v344_v15, %v2947_v52 }
 0x7bc   :  { %v369_v48 = vadd.f32 %v362_v16, %v351_v39 }
 0x7bd   :  { %v357_v17 = vpop.permute.xlu0 %356 }
 0x7be   :  { %v364_v11 = vadd.f32 %v357_v17, %v346_v35  ;;  %v365_v8 = vadd.f32 %v357_v17, %v347_v22  ;;  %v366_v34 = vadd.f32 %v357_v17, %v348_v23  ;;  %v367_v36 = vadd.f32 %v357_v17, %v349_v24 }
 0x7bf   :  { %v2480_v7 = vpop.eup %2479 }
 0x7c0   :  { %v2328_v9 = vmul.f32 %v2480_v7, %v2280_v6 }
 0x7c1   :  { %v2351_v41 = vpop.permute.xlu0 %2350 }
 0x7c2   :  { %2332 = vperm.xlu1 %2467, %v2328_v9  }
 0x7c3   :  { %v2482_v47 = vpop.eup %2481 }
 0x7c4   :  { %v2329_v13 = vmul.f32 %v2482_v47, %v2281_v10 }
 0x7c6   :  { %2337 = vperm.xlu1 %2467, %v2329_v13  }
 0x7ca   :  { %2355 = vperm.xlu1 %2467, %v2283_v14  }
 0x83d   :  { %v2333_v54 = vpop.permute.xlu1 %2332 }
 0x83e   :  { %v2340_v27 = vmul.f32 %v2333_v54, %v2973_v18  ;;  %v2341_v29 = vmul.f32 %v2333_v54, %v2975_v19  ;;  %v2342_v30 = vmul.f32 %v2333_v54, %v2977_v20  ;;  %v2343_v45 = vmul.f32 %v2333_v54, %v2979_v21 }
 0x83f   :  { %v352_v18 = vmul.f32 %v344_v15, %v2962_v4  ;;  %v353_v19 = vmul.f32 %v344_v15, %v2967_v12  ;;  %v368_v12 = vadd.f32 %v362_v16, %v350_v32 }
 0x840   :  { %v2358_v37 = vadd.f32 %v2351_v41, %v2340_v27  ;;  %v2359_v42 = vadd.f32 %v2351_v41, %v2341_v29  ;;  %v2360_v38 = vadd.f32 %v2351_v41, %v2342_v30  ;;  %v2361_v59 = vadd.f32 %v2351_v41, %v2343_v45 }
 0x841   :  { %v2338_v46 = vpop.permute.xlu1 %2337  ;;  %v370_v57 = vadd.f32 %v362_v16, %v352_v18  ;;  %v371_v60 = vadd.f32 %v362_v16, %v353_v19 }
 0x842   :  { %v2366_v20 = vadd.f32 %v2358_v37, %v364_v11  ;;  %v2367_v40 = vadd.f32 %v2359_v42, %v365_v8  ;;  %v2368_v21 = vadd.f32 %v2360_v38, %v366_v34  ;;  %v2369_v43 = vadd.f32 %v2361_v59, %v367_v36 }
 0x843   :  { %v2344_v53 = vmul.f32 %v2338_v46, %v2987_v25  ;;  %v2345_v56 = vmul.f32 %v2338_v46, %v2989_v26  ;;  %v2346_v55 = vmul.f32 %v2338_v46, %v2991_v28  ;;  %v2347_v52 = vmul.f32 %v2338_v46, %v2995_v58 }
 0x844   :  { %v2374_v49 = vmax.f32 %v2366_v20, 0.0  ;;  %v2375_v50 = vmax.f32 %v2367_v40, 0.0  ;;  %v2376_v51 = vmax.f32 %v2368_v21, 0.0  ;;  %v2377_v3 = vmax.f32 %v2369_v43, 0.0 }
 0x845   :  { %v2356_v4 = vpop.permute.xlu1 %2355 }
 0x846   :  { %2382 = vst [vmem:[#allocation2] sm:$0xff] %v2374_v49  ;;  %2383 = vst [vmem:[#allocation2 + $0x8] sm:$0xff] %v2375_v50  ;;  %v2362_v61 = vadd.f32 %v2356_v4, %v2344_v53  ;;  %v2363_v62 = vadd.f32 %v2356_v4, %v2345_v56  ;;  %v2364_v63 = vadd.f32 %v2356_v4, %v2346_v55 }
 0x847   :  { %2384 = vst [vmem:[#allocation2 + $0x10] sm:$0xff] %v2376_v51  ;;  %2385 = vst [vmem:[#allocation2 + $0x18] sm:$0xff] %v2377_v3  ;;  %v2365_v0 = vadd.f32 %v2356_v4, %v2347_v52 }
 0x848   :  { %v2370_v25 = vadd.f32 %v2362_v61, %v368_v12  ;;  %v2371_v26 = vadd.f32 %v2363_v62, %v369_v48  ;;  %v2372_v28 = vadd.f32 %v2364_v63, %v370_v57 }
 0x849   :  { %v2373_v1 = vadd.f32 %v2365_v0, %v371_v60 }
 0x84a   :  { %v2378_v58 = vmax.f32 %v2370_v25, 0.0  ;;  %v2379_v44 = vmax.f32 %v2371_v26, 0.0  ;;  %v2380_v2 = vmax.f32 %v2372_v28, 0.0 }
 0x84b   :  { %v2381_v31 = vmax.f32 %v2373_v1, 0.0 }
 0x84c   :  { %2386 = vst [vmem:[#allocation2 + $0x20] sm:$0xff] %v2378_v58  ;;  %2387 = vst [vmem:[#allocation2 + $0x28] sm:$0xff] %v2379_v44 }
 0x84d   :  { %2388 = vst [vmem:[#allocation2 + $0x30] sm:$0xff] %v2380_v2  ;;  %2389 = vst [vmem:[#allocation2 + $0x38] sm:$0xff] %v2381_v31 }
 0x84e   :  { %2494 = shalt.err (!%p2491_p4)
}
 0x84f   :  { %s2516_s18 = smov 512   ;;  %s2517_s1 = smov 32  }
 0x850   :  { %2401 = dma.vmem_to_hbm [thread:$0]  %s2396_s10, 1024, %s3061_s13, [#allocation3], %s2516_s18, %s2516_s18, %s2517_s1  }
 0x851   :  { %2503 = dma.done.wait [#allocation3], 1024  }
 0x852   :  { %2504 = vsyncadd [#allocation3], 4294966272 }
 0x853   :  { %2405 = vsyncpa [#allocation3], 1 }

</bundles_post_ra>
